<compile_context>
chip_gen: v5e
topology: v5e:2x2
jax: 0.10.0
libtpu: 0.0.40
codegen_flags: <defaults>
</compile_context>

<pallas_src>
import functools

import jax
import jax.numpy as jnp
from jax import lax
from jax.experimental import pallas as pl
from jax.experimental.pallas import tpu as pltpu


def _round_up(x, m):
    return ((x + m - 1) // m) * m


def _rgb_cont_proj_kernel(pcl_ref, feat_ref, grid_ref, *out_refs,
                          well_radius, beta, lane_slice, write_prob):
    # pcl_ref  : (1, Np, 3)   point cloud (x, y, z) for one batch (resident block)
    # feat_ref : (1, Np, C)   per-point features (resident block)
    # grid_ref : (2, TP)      row 0 = pixel row coord, row 1 = pixel col coord
    # outputs  : [prob (1, Np, TP)]  pfeat (1, C, TP)  mask (1, 1, TP)
    if write_prob:
        prob_ref, pfeat_ref, mask_ref = out_refs
    else:
        pfeat_ref, mask_ref = out_refs

    pcl = pcl_ref[0]                       # (Np, 3)
    x = pcl[:, 0:1]                        # (Np, 1)
    y = pcl[:, 1:2]
    z = pcl[:, 2:3] + 1.0                  # add_depth_range; assumes pcl_z > -1
    feat = feat_ref[0]                     # (Np, C)

    tile_p = grid_ref.shape[1]
    n_sub = tile_p // lane_slice

    # Inner loop over lane sub-slices: scf.for bounds the live ranges of the
    # (Np, lane_slice) temporaries so they stay inside the 64-entry vreg file.
    @pl.loop(0, n_sub)
    def _(i):
        off = pl.multiple_of(i * lane_slice, lane_slice)
        g = grid_ref[:, pl.ds(off, lane_slice)]                      # (2, LS)
        gh = g[0:1, :]                                               # (1, LS)
        gw = g[1:2, :]

        # Ideal-well depth. Lower clamp of the reference clip(.,0,10) is dead for
        # z' > 0, and jnp.minimum still yields exactly 10.0 for "far" points.
        kx = jnp.where(jnp.abs(x - gh) <= well_radius, 1.0, 10.0)    # (Np, LS)
        ky = jnp.where(jnp.abs(y - gw) <= well_radius, 1.0, 10.0)
        depth = jnp.minimum(kx * ky * z, 10.0)
        point_mask = (depth != 10.0).astype(jnp.float32)

        # Merged softmax + point-mask renormalization:
        #   p = e*mask / (sum(e*mask) + 1e-8*sum(e))
        # Exact divides only where required (logits); normalization is a single
        # per-pixel reciprocal followed by a broadcast multiply.
        logits = beta / (depth + 1e-5)                               # exact divide
        m = jnp.max(logits, axis=0, keepdims=True)                   # (1, LS)
        e = jnp.exp(logits - m)
        pe = e * point_mask
        s_all = jnp.sum(e, axis=0, keepdims=True)                    # (1, LS)
        s_msk = jnp.sum(pe, axis=0, keepdims=True)
        inv = 1.0 / (s_msk + 1e-8 * s_all)                           # exact, per-pixel

        # pix_mask == (sum(point_mask) != 0): whenever any non-far point exists,
        # the per-pixel max logit belongs to one of them (min depth < 10), and
        # that point contributes e == 1 to s_msk, so s_msk > 0 <=> any in well.
        pix_mask = (s_msk > 0.0).astype(jnp.float32)                 # (1, LS)

        # Feature splat on the MXU (idle otherwise); scale the small (C, LS)
        # result by the per-pixel normalization instead of the (Np, LS) operand.
        splat = lax.dot_general(feat, pe, (((0,), (0,)), ((), ())),
                                precision=lax.Precision.HIGHEST,
                                preferred_element_type=jnp.float32)  # (C, LS)
        pfeat_ref[0, :, pl.ds(off, lane_slice)] = splat * (inv * pix_mask)
        mask_ref[0, :, pl.ds(off, lane_slice)] = pix_mask
        if write_prob:
            prob_ref[0, :, pl.ds(off, lane_slice)] = pe * inv


def rgb_cont_proj(pcl, feat, grid_h, grid_w, *, well_radius=1.0, beta=100.0,
                  mode="rgb", return_prob=True):
    """pcl (B,N,3), feat (B,N,C) -> (proj_feat (B,H,W,C), prob (B,N,H,W)|None, mask (B,H,W))."""
    assert mode in ("rgb", "normals"), "partseg mode not implemented"
    B, N, three = pcl.shape
    assert three == 3, "expected (B, N, 3) point cloud"
    Bf, Nf, C = feat.shape
    assert Bf == B and Nf == N

    pcl = pcl.astype(jnp.float32)
    feat = feat.astype(jnp.float32)

    # Pad the point axis to a sublane multiple with "far" points: out of every
    # well (x=y=1e9), depth exactly 10 -> masked out; their e-contribution only
    # enters the 1e-8*sum(e) epsilon term (negligible).
    n_pad = _round_up(max(N, 8), 8)
    if n_pad > N:
        far = jnp.broadcast_to(jnp.array([1e9, 1e9, 9.0], jnp.float32),
                               (B, n_pad - N, 3))
        pcl = jnp.concatenate([pcl, far], axis=1)
        feat = jnp.concatenate([feat, jnp.zeros((B, n_pad - N, C), jnp.float32)],
                               axis=1)

    P = grid_h * grid_w
    p128 = _round_up(P, 128)

    # Lane tile (DMA / writeback granularity): largest that keeps the dominant
    # double-buffered prob block within budget; never wider than the pixel count.
    prob_block_budget = 12 << 20
    tile_p = 128
    for cand in (256, 512, 1024, 2048):
        if cand > p128:
            break
        if 2 * n_pad * cand * 4 * (2 if return_prob else 1) <= prob_block_budget:
            tile_p = cand
    p_pad = _round_up(P, tile_p)

    # In-kernel lane sub-slice: bound (n_pad, LS) f32 temps to ~16 vregs each.
    lane_slice = 128
    for cand in (256, 512, 1024):
        if cand <= tile_p and n_pad * cand <= 16384:
            lane_slice = cand
    # TODO(synk): for very large N (>~2K) an additional N-chunk loop with an
    # online max would be needed to keep temporaries vreg-resident.

    # Combined pixel-coordinate table (one input instead of two tiny DMAs).
    # Padded tail pixels are pushed far outside every well; their (finite)
    # outputs live only in padded columns and are sliced off below.
    pix = jnp.arange(p_pad, dtype=jnp.int32)
    valid = pix < P
    gh = jnp.where(valid, (pix // grid_w).astype(jnp.float32), 1e9)
    gw = jnp.where(valid, (pix % grid_w).astype(jnp.float32), 1e9)
    grid_hw = jnp.stack([gh, gw], axis=0)                       # (2, p_pad)

    kernel = functools.partial(_rgb_cont_proj_kernel,
                               well_radius=float(well_radius), beta=float(beta),
                               lane_slice=lane_slice, write_prob=return_prob)

    out_shape = []
    out_specs = []
    if return_prob:
        out_shape.append(jax.ShapeDtypeStruct((B, n_pad, p_pad), jnp.float32))
        out_specs.append(pl.BlockSpec((1, n_pad, tile_p), lambda b, j: (b, 0, j)))
    out_shape += [
        jax.ShapeDtypeStruct((B, C, p_pad), jnp.float32),       # proj_feat (C major)
        jax.ShapeDtypeStruct((B, 1, p_pad), jnp.float32),       # pixel mask
    ]
    out_specs += [
        pl.BlockSpec((1, C, tile_p), lambda b, j: (b, 0, j)),
        pl.BlockSpec((1, 1, tile_p), lambda b, j: (b, 0, j)),
    ]

    # Explicit VMEM budget: double-buffered blocks + generous temp slack, clamped
    # to stay inside every generation's scoped/physical VMEM (incl. v7x 64 MiB).
    block_bytes = 4 * 2 * ((n_pad * tile_p if return_prob else 0)
                           + C * tile_p + tile_p + 2 * tile_p
                           + n_pad * 3 + n_pad * C)
    temp_bytes = 4 * 8 * n_pad * lane_slice
    vmem_limit = int(min(max(block_bytes + temp_bytes + (2 << 20), 24 << 20),
                         32 << 20))

    outs = pl.pallas_call(
        kernel,
        out_shape=tuple(out_shape),
        # Batch outer / pixel-tile inner: pcl & feat blocks map to (b,0,0) and are
        # not re-DMA'd between consecutive pixel tiles of the same batch.
        grid=(B, p_pad // tile_p),
        in_specs=[
            pl.BlockSpec((1, n_pad, 3), lambda b, j: (b, 0, 0)),
            pl.BlockSpec((1, n_pad, C), lambda b, j: (b, 0, 0)),
            pl.BlockSpec((2, tile_p), lambda b, j: (0, j)),
        ],
        out_specs=tuple(out_specs),
        compiler_params=pltpu.CompilerParams(
            dimension_semantics=("parallel", "parallel"),
            vmem_limit_bytes=vmem_limit),
    )(pcl, feat, grid_hw)

    if return_prob:
        prob_flat, pfeat_flat, mask_flat = outs
        prob = prob_flat[:, :N, :P].reshape(B, N, grid_h, grid_w)
    else:
        pfeat_flat, mask_flat = outs
        prob = None
    proj_feat = jnp.transpose(
        pfeat_flat[:, :, :P].reshape(B, C, grid_h, grid_w), (0, 2, 3, 1))
    mask = mask_flat[:, 0, :P].reshape(B, grid_h, grid_w)
    return proj_feat, prob, mask


def _reference(pcl, feat, grid_h, grid_w, well_radius=1.0, beta=100.0):
    """Pure-JAX reference mirroring the PyTorch forward (rgb mode)."""
    pcl = pcl.astype(jnp.float32)
    x, y = pcl[..., 0], pcl[..., 1]
    z = pcl[..., 2] + 1.0
    gh = jnp.arange(grid_h, dtype=jnp.float32)
    gw = jnp.arange(grid_w, dtype=jnp.float32)
    kx = jnp.where(jnp.abs(x[:, :, None] - gh[None, None, :]) <= well_radius, 1.0, 10.0)
    ky = jnp.where(jnp.abs(y[:, :, None] - gw[None, None, :]) <= well_radius, 1.0, 10.0)
    depth = jnp.clip(kx[:, :, :, None] * ky[:, :, None, :] * z[:, :, None, None],
                     0.0, 10.0)                                            # (B,N,H,W)
    prob = jax.nn.softmax(beta / (depth + 1e-5), axis=1)
    point_mask = (depth != 10.0).astype(jnp.float32)
    prob = prob * point_mask
    prob = prob / (jnp.sum(prob, axis=1, keepdims=True) + 1e-8)
    proj_feat = jnp.einsum("bnhw,bnc->bhwc", prob, feat.astype(jnp.float32),
                           precision=jax.lax.Precision.HIGHEST)
    mask = (jnp.sum(point_mask, axis=1) != 0.0).astype(jnp.float32)
    proj_feat = proj_feat * mask[..., None]
    return proj_feat, prob, mask


if __name__ == "__main__":
    key = jax.random.PRNGKey(0)
    k1, k2 = jax.random.split(key)
    B, N, C = 2, 64, 3
    H = W = 16

    pcl = jax.random.uniform(k1, (B, N, 3), jnp.float32, minval=-1.0, maxval=1.0)
    feat = jax.random.uniform(k2, (B, N, C), jnp.float32)

    proj_feat, prob, mask = rgb_cont_proj(pcl, feat, H, W,
                                          well_radius=1.0, beta=100.0, mode="rgb")
    jax.block_until_ready((proj_feat, prob, mask))

    # prob-less variant (skips the dominant (B,N,P) f32 writeback, v5e feedback).
    pf2, _, m2 = rgb_cont_proj(pcl, feat, H, W, well_radius=1.0, beta=100.0,
                               mode="rgb", return_prob=False)
    jax.block_until_ready((pf2, m2))

    ref_pf, ref_prob, ref_mask = _reference(pcl, feat, H, W, 1.0, 100.0)
    jax.block_until_ready((ref_pf, ref_prob, ref_mask))

    assert proj_feat.shape == (B, H, W, C)
    assert prob.shape == (B, N, H, W)
    assert mask.shape == (B, H, W)
    assert jnp.array_equal(mask, ref_mask)
    assert jnp.allclose(prob, ref_prob, atol=1e-4, rtol=1e-3)
    assert jnp.allclose(proj_feat, ref_pf, atol=1e-4, rtol=1e-2)
    assert jnp.array_equal(m2, mask)
    assert jnp.allclose(pf2, proj_feat, atol=1e-6, rtol=1e-5)
    print("KERNEL_OK")
</pallas_src>

<mosaic_0001>
module attributes {stable_mosaic.version = 11 : i64} {
  func.func @_rgb_cont_proj_kernel(%arg0: i32, %arg1: i32, %arg2: memref<1x64x3xf32, #tpu.memory_space<vmem>>, %arg3: memref<1x64x3xf32, #tpu.memory_space<vmem>>, %arg4: memref<2x256xf32, #tpu.memory_space<vmem>>, %arg5: memref<1x64x256xf32, #tpu.memory_space<vmem>>, %arg6: memref<1x3x256xf32, #tpu.memory_space<vmem>>, %arg7: memref<1x1x256xf32, #tpu.memory_space<vmem>>) attributes {dimension_semantics = [#tpu.dimension_semantics<parallel>, #tpu.dimension_semantics<parallel>], iteration_bounds = array<i64: 2, 1>, scalar_prefetch = 0 : i64, scratch_operands = 0 : i64, tpu.core_type = #tpu.core_type<tc>, window_params = [{transform_indices = @transform_0, window_bounds = array<i64: 1, 64, 3>}, {transform_indices = @transform_1, window_bounds = array<i64: 1, 64, 3>}, {transform_indices = @transform_2, window_bounds = array<i64: 2, 256>}, {transform_indices = @transform_3, window_bounds = array<i64: 1, 64, 256>}, {transform_indices = @transform_4, window_bounds = array<i64: 1, 3, 256>}, {transform_indices = @transform_5, window_bounds = array<i64: 1, 1, 256>}]} {
    %c0 = arith.constant 0 : index
    %c0_0 = arith.constant 0 : index
    %c0_1 = arith.constant 0 : index
    %0 = vector.load %arg2[%c0, %c0_0, %c0_1] : memref<1x64x3xf32, #tpu.memory_space<vmem>>, vector<1x64x3xf32>
    %1 = vector.shape_cast %0 : vector<1x64x3xf32> to vector<64x3xf32>
    %2 = vector.extract_strided_slice %1 {offsets = [0, 0], sizes = [64, 1], strides = [1, 1]} : vector<64x3xf32> to vector<64x1xf32>
    %3 = vector.extract_strided_slice %1 {offsets = [0, 1], sizes = [64, 1], strides = [1, 1]} : vector<64x3xf32> to vector<64x1xf32>
    %4 = vector.extract_strided_slice %1 {offsets = [0, 2], sizes = [64, 1], strides = [1, 1]} : vector<64x3xf32> to vector<64x1xf32>
    %cst = arith.constant 1.000000e+00 : f32
    %5 = vector.broadcast %cst : f32 to vector<64x1xf32>
    %6 = arith.addf %4, %5 : vector<64x1xf32>
    %c0_2 = arith.constant 0 : index
    %c0_3 = arith.constant 0 : index
    %c0_4 = arith.constant 0 : index
    %7 = vector.load %arg3[%c0_2, %c0_3, %c0_4] : memref<1x64x3xf32, #tpu.memory_space<vmem>>, vector<1x64x3xf32>
    %8 = vector.shape_cast %7 : vector<1x64x3xf32> to vector<64x3xf32>
    %c0_i32 = arith.constant 0 : i32
    %c1_i32 = arith.constant 1 : i32
    %9 = arith.muli %c0_i32, %c1_i32 : i32
    %c0_i32_5 = arith.constant 0 : i32
    %10 = arith.addi %c0_i32_5, %9 : i32
    %c256_i32 = arith.constant 256 : i32
    %11 = arith.muli %10, %c256_i32 : i32
    %12 = tpu.assume_multiple %11, 256 : i32
    %c0_6 = arith.constant 0 : index
    %13 = arith.index_cast %12 : i32 to index
    %14 = vector.load %arg4[%c0_6, %13] : memref<2x256xf32, #tpu.memory_space<vmem>>, vector<2x256xf32>
    %15 = vector.extract_strided_slice %14 {offsets = [0, 0], sizes = [1, 256], strides = [1, 1]} : vector<2x256xf32> to vector<1x256xf32>
    %16 = vector.extract_strided_slice %14 {offsets = [1, 0], sizes = [1, 256], strides = [1, 1]} : vector<2x256xf32> to vector<1x256xf32>
    %17 = vector.broadcast %2 : vector<64x1xf32> to vector<64x256xf32>
    %18 = vector.broadcast %15 : vector<1x256xf32> to vector<64x256xf32>
    %19 = arith.subf %17, %18 : vector<64x256xf32>
    %20 = math.absf %19 : vector<64x256xf32>
    %cst_7 = arith.constant 1.000000e+00 : f32
    %21 = vector.broadcast %cst_7 : f32 to vector<64x256xf32>
    %22 = arith.cmpf ole, %20, %21 : vector<64x256xf32>
    %cst_8 = arith.constant 1.000000e+00 : f32
    %cst_9 = arith.constant 1.000000e+01 : f32
    %23 = vector.broadcast %cst_8 : f32 to vector<64x256xf32>
    %24 = vector.broadcast %cst_9 : f32 to vector<64x256xf32>
    %25 = arith.select %22, %23, %24 : vector<64x256xi1>, vector<64x256xf32>
    %26 = vector.broadcast %3 : vector<64x1xf32> to vector<64x256xf32>
    %27 = vector.broadcast %16 : vector<1x256xf32> to vector<64x256xf32>
    %28 = arith.subf %26, %27 : vector<64x256xf32>
    %29 = math.absf %28 : vector<64x256xf32>
    %cst_10 = arith.constant 1.000000e+00 : f32
    %30 = vector.broadcast %cst_10 : f32 to vector<64x256xf32>
    %31 = arith.cmpf ole, %29, %30 : vector<64x256xf32>
    %cst_11 = arith.constant 1.000000e+00 : f32
    %cst_12 = arith.constant 1.000000e+01 : f32
    %32 = vector.broadcast %cst_11 : f32 to vector<64x256xf32>
    %33 = vector.broadcast %cst_12 : f32 to vector<64x256xf32>
    %34 = arith.select %31, %32, %33 : vector<64x256xi1>, vector<64x256xf32>
    %35 = arith.mulf %25, %34 : vector<64x256xf32>
    %36 = vector.broadcast %6 : vector<64x1xf32> to vector<64x256xf32>
    %37 = arith.mulf %35, %36 : vector<64x256xf32>
    %cst_13 = arith.constant 1.000000e+01 : f32
    %38 = vector.broadcast %cst_13 : f32 to vector<64x256xf32>
    %39 = arith.minimumf %37, %38 : vector<64x256xf32>
    %cst_14 = arith.constant 1.000000e+01 : f32
    %40 = vector.broadcast %cst_14 : f32 to vector<64x256xf32>
    %41 = arith.cmpf one, %39, %40 : vector<64x256xf32>
    %42 = arith.extui %41 : vector<64x256xi1> to vector<64x256xi32>
    %43 = arith.sitofp %42 : vector<64x256xi32> to vector<64x256xf32>
    %cst_15 = arith.constant 9.99999974E-6 : f32
    %44 = vector.broadcast %cst_15 : f32 to vector<64x256xf32>
    %45 = arith.addf %39, %44 : vector<64x256xf32>
    %cst_16 = arith.constant 1.000000e+02 : f32
    %46 = vector.broadcast %cst_16 : f32 to vector<64x256xf32>
    %47 = arith.divf %46, %45 : vector<64x256xf32>
    %cst_17 = arith.constant dense<0xFF800000> : vector<256xf32>
    %48 = vector.multi_reduction <maximumf>, %47, %cst_17 [0] : vector<64x256xf32> to vector<256xf32>
    %49 = vector.shape_cast %48 : vector<256xf32> to vector<1x256xf32>
    %50 = vector.broadcast %49 : vector<1x256xf32> to vector<64x256xf32>
    %51 = arith.subf %47, %50 : vector<64x256xf32>
    %52 = math.exp %51 : vector<64x256xf32>
    %53 = arith.mulf %52, %43 : vector<64x256xf32>
    %cst_18 = arith.constant dense<0.000000e+00> : vector<256xf32>
    %54 = vector.multi_reduction <add>, %52, %cst_18 [0] : vector<64x256xf32> to vector<256xf32>
    %55 = vector.shape_cast %54 : vector<256xf32> to vector<1x256xf32>
    %cst_19 = arith.constant dense<0.000000e+00> : vector<256xf32>
    %56 = vector.multi_reduction <add>, %53, %cst_19 [0] : vector<64x256xf32> to vector<256xf32>
    %57 = vector.shape_cast %56 : vector<256xf32> to vector<1x256xf32>
    %cst_20 = arith.constant 9.99999993E-9 : f32
    %58 = vector.broadcast %cst_20 : f32 to vector<1x256xf32>
    %59 = arith.mulf %58, %55 : vector<1x256xf32>
    %60 = arith.addf %57, %59 : vector<1x256xf32>
    %cst_21 = arith.constant 1.000000e+00 : f32
    %61 = vector.broadcast %cst_21 : f32 to vector<1x256xf32>
    %62 = arith.divf %61, %60 : vector<1x256xf32>
    %cst_22 = arith.constant 0.000000e+00 : f32
    %63 = vector.broadcast %cst_22 : f32 to vector<1x256xf32>
    %64 = arith.cmpf ogt, %57, %63 : vector<1x256xf32>
    %65 = arith.extui %64 : vector<1x256xi1> to vector<1x256xi32>
    %66 = arith.sitofp %65 : vector<1x256xi32> to vector<1x256xf32>
    %cst_23 = arith.constant dense<0.000000e+00> : vector<3x256xf32>
    %67 = tpu.matmul %8, %53, %cst_23 {dimension_numbers = #tpu.dot_dimension_numbers<[0], [0], [1], [1], [0, 1, 1, 1], [], []>, precision = #tpu.contract_precision<fp32>} : vector<64x3xf32>, vector<64x256xf32>, vector<3x256xf32> -> vector<3x256xf32>
    %68 = arith.mulf %62, %66 : vector<1x256xf32>
    %69 = vector.broadcast %68 : vector<1x256xf32> to vector<3x256xf32>
    %70 = arith.mulf %67, %69 : vector<3x256xf32>
    %c0_24 = arith.constant 0 : index
    %c0_25 = arith.constant 0 : index
    %71 = arith.index_cast %12 : i32 to index
    %72 = vector.load %arg6[%c0_24, %c0_25, %71] : memref<1x3x256xf32, #tpu.memory_space<vmem>>, vector<1x3x256xf32>
    %73 = vector.shape_cast %72 : vector<1x3x256xf32> to vector<3x256xf32>
    %74 = vector.shape_cast %70 : vector<3x256xf32> to vector<1x3x256xf32>
    tpu.vector_store %arg6[%c0_24, %c0_25, %71], %74 {strides = array<i32>} : memref<1x3x256xf32, #tpu.memory_space<vmem>>, vector<1x3x256xf32>,
    %c0_26 = arith.constant 0 : index
    %c0_27 = arith.constant 0 : index
    %75 = arith.index_cast %12 : i32 to index
    %76 = vector.load %arg7[%c0_26, %c0_27, %75] : memref<1x1x256xf32, #tpu.memory_space<vmem>>, vector<1x1x256xf32>
    %77 = vector.shape_cast %76 : vector<1x1x256xf32> to vector<1x256xf32>
    %78 = vector.shape_cast %66 : vector<1x256xf32> to vector<1x1x256xf32>
    tpu.vector_store %arg7[%c0_26, %c0_27, %75], %78 {strides = array<i32>} : memref<1x1x256xf32, #tpu.memory_space<vmem>>, vector<1x1x256xf32>,
    %79 = vector.broadcast %62 : vector<1x256xf32> to vector<64x256xf32>
    %80 = arith.mulf %53, %79 : vector<64x256xf32>
    %c0_28 = arith.constant 0 : index
    %c0_29 = arith.constant 0 : index
    %81 = arith.index_cast %12 : i32 to index
    %82 = vector.load %arg5[%c0_28, %c0_29, %81] : memref<1x64x256xf32, #tpu.memory_space<vmem>>, vector<1x64x256xf32>
    %83 = vector.shape_cast %82 : vector<1x64x256xf32> to vector<64x256xf32>
    %84 = vector.shape_cast %80 : vector<64x256xf32> to vector<1x64x256xf32>
    tpu.vector_store %arg5[%c0_28, %c0_29, %81], %84 {strides = array<i32>} : memref<1x64x256xf32, #tpu.memory_space<vmem>>, vector<1x64x256xf32>,
    %c1_i32_30 = arith.constant 1 : i32
    return
  }
  func.func @transform_0(%arg0: i32, %arg1: i32) -> (i32, i32, i32) {
    %c0_i32 = arith.constant 0 : i32
    %c0_i32_0 = arith.constant 0 : i32
    %c0_i32_1 = arith.constant 0 : i32
    return %arg0, %c0_i32, %c0_i32_0 : i32, i32, i32
  }
  func.func @transform_1(%arg0: i32, %arg1: i32) -> (i32, i32, i32) {
    %c0_i32 = arith.constant 0 : i32
    %c0_i32_0 = arith.constant 0 : i32
    %c0_i32_1 = arith.constant 0 : i32
    return %arg0, %c0_i32, %c0_i32_0 : i32, i32, i32
  }
  func.func @transform_2(%arg0: i32, %arg1: i32) -> (i32, i32) {
    %c0_i32 = arith.constant 0 : i32
    %c0_i32_0 = arith.constant 0 : i32
    return %c0_i32, %arg1 : i32, i32
  }
  func.func @transform_3(%arg0: i32, %arg1: i32) -> (i32, i32, i32) {
    %c0_i32 = arith.constant 0 : i32
    %c0_i32_0 = arith.constant 0 : i32
    return %arg0, %c0_i32, %arg1 : i32, i32, i32
  }
  func.func @transform_4(%arg0: i32, %arg1: i32) -> (i32, i32, i32) {
    %c0_i32 = arith.constant 0 : i32
    %c0_i32_0 = arith.constant 0 : i32
    return %arg0, %c0_i32, %arg1 : i32, i32, i32
  }
  func.func @transform_5(%arg0: i32, %arg1: i32) -> (i32, i32, i32) {
    %c0_i32 = arith.constant 0 : i32
    %c0_i32_0 = arith.constant 0 : i32
    return %arg0, %c0_i32, %arg1 : i32, i32, i32
  }
}

</mosaic_0001>

<bundles_post_ra>
// kernel: tpu_custom_call.1
= control target key start
LH: loop header
LB: loop body
LE: loop exit
PB: predicated region body
PF: predicated region fallthrough
CT: control target
= control target key end

     0   :  { %s3668_s0 = inlined_call_operand.vmem [shape: f32[2,64,3], index: 0, kind: input, shape index: {}]   ;;  %s3669_s1 = inlined_call_operand.vmem [shape: f32[2,64,3], index: 1, kind: input, shape index: {}]   ;;  %s3670_s2 = inlined_call_operand.vmem [shape: f32[2,256], index: 2, kind: input, shape index: {}]   ;;  %s3671_s3 = inlined_call_operand.hbm [shape: f32[2,64,256], index: 3, kind: output, shape index: {0}]   ;;  %s3672_s4 = inlined_call_operand.vmem [shape: f32[2,3,256], index: 4, kind: output, shape index: {1}]   ;;  %s3673_s5 = inlined_call_operand.hbm [shape: f32[2,1,256], index: 5, kind: output, shape index: {2}]  }
   0x1   :  { %3705 = sst [smem:[#allocation19_spill]] %s3668_s0 }
   0x2   :  { %3706 = sst [smem:[#allocation20_spill]] %s3669_s1 }
   0x3   :  { %3707 = sst [smem:[#allocation21_spill]] %s3670_s2 }
   0x4   :  { %3708 = sst [smem:[#allocation22_spill]] %s3671_s3 }
   0x5   :  { %11 = vsyncpa [#allocation3], 0 }
   0x6   :  { %13 = vsyncpa [#allocation3 + $0x1], 0 }
   0x7   :  { %14 = vsyncpa [#allocation5], 0 }
   0x8   :  { %16 = vsyncpa [#allocation5 + $0x1], 0  ;;  %s2257_s18 = smov 0   ;;  %s2259_s19 = smov 0  }
   0x9   :  { %s2261_s20 = smov 0   ;;  %s2263_s21 = smov 0  }
   0xa   :  { %s2265_s22 = smov 0   ;;  %s2267_s23 = smov 0  }
   0xb LB: > { %s1917_s24 = sadd.s32 4294967295, %s2218_s23   ;;  %s1918_s25 = sadd.s32 4294967294, %s2218_s23   ;;  %s2218_s23 = sphi %s2267_s23, %s22_s23   ;;  %s2214_s22 = sphi %s2265_s22, %s3830_s22   ;;  %s2210_s21 = sphi %s2263_s21, %s3829_s21   ;;  %s2206_s20 = sphi %s2261_s20, %s3828_s20   ;;  %s2202_s19 = sphi %s2259_s19, %s3827_s19   ;;  %s2198_s18 = sphi %s2257_s18, %s3826_s18  }
   0xc   : > { %s34_s26 = sadd.s32 1, %s2214_s22  ;;  %s121_s27 = sadd.s32 1, %s2206_s20 }
   0xd   : > { %p36_p0 = scmp.ge.s32.totalorder %s34_s26, 2  ;;  %p131_p1 = scmp.ne.s32.totalorder %s2206_s20, %s2202_s19 }
   0xe   : > { %p132_p2 = scmp.eq.s32.totalorder %s1917_s24, 1  ;;  %p137_p3 = scmp.ne.s32.totalorder %s2202_s19, %s2198_s18 }
   0xf   : > { %s3832_s26 = smov (%p36_p0, %s34_s26), 0  ;;  %p138_p5 = scmp.eq.s32.totalorder %s1918_s25, 1 }
  0x10   : > { %p2297_p4 = por %p132_p2, %p131_p1  ;;  %s116_s29 = ssub.s32 %s2214_s22, %s3832_s26 }
  0x11   : > { %p1922_p6 = scmp.ge.s32.totalorder %s2218_s23, 1  ;;  %p119_p7 = scmp.eq.s32.totalorder %s116_s29, 0 }
  0x12   : > { %p2304_p8 = por %p138_p5, %p137_p3  ;;  %p237_p9 = scmp.lt.s32.totalorder %s2218_s23, 3 }
  0x13   : > { %s2310_s6 = scalar_select %p119_p7, %s2206_s20, %s121_s27  }
  0x14   : > { %p238_p10 = pnand %p1922_p6, %p237_p9 }
  0x16   : > { %241 = sbr.rel (%p238_p10) target bundleno = 504 (0x1f8), region = 32 }
  0x1b   : > { %p289_p11 = scmp.lt.s32.totalorder %s2210_s21, 1  ;;  %v2220_v0 = vmov 1   ;;  %v2221_v1 = vmov 0   ;;  %s3711_s0 = sld [smem:[#allocation19_spill]]  ;;  %v2222_v12 = vmov 2   ;;  %v2223_v60 = vmov 10.0  }
  0x1c   : > { %2029 = vset.pattern.permute.xlu2 %v2220_v0  ;;  %2028 = vset.pattern.permute.xlu1 %v2221_v1  ;;  %s3712_s1 = sld [smem:[#allocation20_spill]]  ;;  %s3449_s17 = sand.u32 1, %s2202_s19  }
  0x1d   : > { %2027 = vset.pattern.permute.xlu0 %v2221_v1  ;;  %s2314_s7 = scalar_select %p289_p11, %s2210_s21, 1 }
  0x1e   : > { %s3713_s2 = sld [smem:[#allocation21_spill]]  ;;  %s1924_s24 = sshll.u32 %s3449_s17, 1 }
  0x1f   : > { %s1956_s8 = sshll.u32 %s2314_s7, 6  ;;  %s3498_s25 = scalar_lea.vmem [#allocation4], %s1924_s24 }
  0x20   : > { %s1923_s27 = sshll.u32 %s3449_s17, 7  ;;  %s3825_s3 = sld [smem:[#allocation22_spill]] }
  0x21   : > { %s293_s11 = scalar_lea.vmem %s3711_s0, %s1956_s8  ;;  %s3561_s29 = scalar_lea.vmem [#allocation2], %s1923_s27 }
  0x22   : > { %v319_v2 = vld [vmem:[%s293_s11 + $0x10] sm:$0xff]  ;;  %v317_v3 = vld [vmem:[%s293_s11] sm:$0xff]  ;;  %v320_v4 = vld [vmem:[%s293_s11 + $0x18] sm:$0xff]  ;;  %s2327_s14 = scalar_lea.vmem %s3712_s1, %s1956_s8  ;;  %s1959_s8 = sshll.u32 %s2210_s21, 7 }
  0x23   : > { %354 = vperm.xlu1 %2028, %v319_v2   ;;  %454 = vperm.xlu2 %2029, %v317_v3   ;;  %v318_v5 = vld [vmem:[%s293_s11 + $0x8] sm:$0xff]  ;;  %v321_v6 = vld [vmem:[%s293_s11 + $0x20] sm:$0xff]  ;;  %v323_v8 = vld [vmem:[%s293_s11 + $0x30] sm:$0xff]  ;;  %v325_v11 = vadd.f32 1.0, %v317_v3  ;;  %v327_v14 = vadd.f32 1.0, %v319_v2  ;;  %v328_v15 = vadd.f32 1.0, %v320_v4 }
  0x24   : > { %344 = vperm.xlu0 %2027, %v317_v3   ;;  %v322_v7 = vld [vmem:[%s293_s11 + $0x28] sm:$0xff]  ;;  %v324_v9 = vld [vmem:[%s293_s11 + $0x38] sm:$0xff]  ;;  %v326_v10 = vadd.f32 1.0, %v318_v5  ;;  %v331_v13 = vadd.f32 1.0, %v323_v8  ;;  %v329_v16 = vadd.f32 1.0, %v321_v6  ;;  %v333_v20 = vld [vmem:[%s2327_s14] sm:$0xff] }
  0x25   : > { %v330_v17 = vadd.f32 1.0, %v322_v7  ;;  %v332_v18 = vadd.f32 1.0, %v324_v9  ;;  %v334_v22 = vld [vmem:[%s2327_s14 + $0x8] sm:$0xff]  ;;  %v335_v24 = vld [vmem:[%s2327_s14 + $0x10] sm:$0xff]  ;;  %v341_v27 = vld [vmem:[%s3713_s2] sm:$0xf] }
  0x26   : > { %v383_v28 = vperm.slane %v341_v27, 0  ;;  %v336_v30 = vld [vmem:[%s2327_s14 + $0x18] sm:$0xff]  ;;  %v485_v31 = vperm.slane %v341_v27, 1  ;;  %v384_v32 = vperm.slane %v341_v27, 2  ;;  %v486_v36 = vperm.slane %v341_v27, 3  ;;  %v337_v40 = vld [vmem:[%s2327_s14 + $0x20] sm:$0xff]  ;;  %s1721_s11 = scalar_lea.hbm %s3825_s3, %s1959_s8 }
  0x27   : > { %v338_v53 = vld [vmem:[%s2327_s14 + $0x28] sm:$0xff]  ;;  %s1722_s12 = sshll.u32 %s3561_s29, 4  ;;  %s1724_s13 = sshll.u32 %s1721_s11, 4  ;;  %s1723_s12 = int_to_ptr.vmem [resolvable:$true] %s1722_s12  ;;  %s1725_s13 = int_to_ptr.hbm [resolvable:$true] %s1724_s13 }
  0x28   : > { %v2342_v33 = vperm.slane %v383_v28, 0  ;;  %v2346_v37 = vperm.slane %v485_v31, 1  ;;  %v2348_v38 = vperm.slane %v384_v32, 0  ;;  %v2352_v41 = vperm.slane %v486_v36, 1  ;;  %s2122_s15 = sshra.s32 %s1725_s13, 4  ;;  %s2128_s0 = scalar_lea.hbm %s3825_s3, 256  ;;  %s2123_s15 = int_to_ptr.hbm [resolvable:$true] %s2122_s15 }
  0x29   : > { %s2124_s16 = scalar_lea.hbm %s2123_s15, 128  ;;  %p2129_p1 = scmp.lt.s32.totalorder %s2123_s15, %s3825_s3 }
  0x2a   : > { %p2125_p12 = scmp.ne.s32.totalorder %s2123_s15, %s2124_s16  ;;  %p2130_p2 = scmp.lt.s32.totalorder %s2128_s0, %s2124_s16 }
  0x2b   : > { %359 = vperm.xlu1 %2028, %v320_v4   ;;  %458 = vperm.xlu2 %2029, %v318_v5  }
  0x2c   : > { %349 = vperm.xlu0 %2027, %v318_v5   ;;  %p2126_p13 = pnand %p2125_p12, %p2297_p4  ;;  %p2131_p3 = por %p2130_p2, %p2129_p1 }
  0x2e   : > { %p2127_p0 = pneg %p2126_p13 }
  0x30   : > { %p2132_p5 = pnand %p2131_p3, %p2127_p0 }
  0x33   : > { %2031 = vset.pattern.permute.xlu1 %v2220_v0  ;;  %2032 = vset.pattern.permute.xlu2 %v2221_v1 }
  0x34   : > { %2030 = vset.pattern.permute.xlu0 %v2220_v0  ;;  %466 = vperm.xlu1 %2031, %v320_v4  }
  0x35   : > { %364 = vperm.xlu2 %2032, %v321_v6   ;;  %462 = vperm.xlu0 %2030, %v319_v2  }
  0x3c   : > { %2033 = vset.pattern.permute.xlu1 %v2221_v1 }
  0x3d   : > { %2034 = vset.pattern.permute.xlu2 %v2220_v0  ;;  %474 = vperm.xlu0 %2030, %v322_v7  }
  0x3e   : > { %369 = vperm.xlu1 %2033, %v322_v7   ;;  %470 = vperm.xlu2 %2034, %v321_v6  }
  0x45   : > { %478 = vperm.xlu0 %2030, %v323_v8  }
  0x46   : > { %374 = vperm.xlu1 %2033, %v323_v8   ;;  %2035 = vset.pattern.permute.xlu2 %v2221_v1 }
  0x47   : > { %379 = vperm.xlu2 %2035, %v324_v9  }
  0x4d   : > { %2038 = vset.pattern.permute.xlu0 %v2222_v12 }
  0x4e   : > { %2036 = vset.pattern.permute.xlu1 %v2220_v0  ;;  %578 = vperm.xlu0 %2038, %v326_v10  }
  0x4f   : > { %482 = vperm.xlu1 %2036, %v324_v9   ;;  %2037 = vset.pattern.permute.xlu2 %v2222_v12 }
  0x50   : > { %573 = vperm.xlu2 %2037, %v325_v11  }
  0x56   : > { %603 = vperm.xlu0 %2038, %v331_v13  }
  0x57   : > { %2039 = vset.pattern.permute.xlu1 %v2222_v12  ;;  %v339_v12 = vld [vmem:[%s2327_s14 + $0x30] sm:$0xff] }
  0x58   : > { %583 = vperm.xlu1 %2039, %v327_v14   ;;  %588 = vperm.xlu2 %2037, %v328_v15  }
  0x60   : > { %593 = vperm.xlu1 %2039, %v329_v16   ;;  %598 = vperm.xlu2 %2037, %v330_v17  }
  0x68   : > { %608 = vperm.xlu1 %2039, %v332_v18  }
  0x7d   : > { %v455_v19 = vpop.permute.xlu2 %454 }
  0x7e   : > { %v491_v42 = vsub.f32 %v455_v19, %v2346_v37  ;;  %v492_v46 = vsub.f32 %v455_v19, %v2352_v41 }
  0x80   : > { %v507_v47 = vand.u32 2147483647, %v491_v42  ;;  %v508_v54 = vand.u32 2147483647, %v492_v46 }
  0x82   : > { %vm523_vm1 = vcmp.le.f32.partialorder %v507_v47, 1.0  ;;  %vm524_vm3 = vcmp.le.f32.partialorder %v508_v54, 1.0 }
  0x83   : > { %v539_v1 = vsel %vm523_vm1, 1.0, %v2223_v60  ;;  %v540_v13 = vsel %vm524_vm3, 1.0, %v2223_v60 }
  0x85   : > { %v459_v21 = vpop.permute.xlu2 %458 }
  0x86   : > { %1129 = vxpose.xlu2.b32.start [1/8] (short) (narrow) %v333_v20, 8  ;;  %v493_v48 = vsub.f32 %v459_v21, %v2346_v37  ;;  %v494_v51 = vsub.f32 %v459_v21, %v2352_v41 }
  0x88   : > { %v509_v56 = vand.u32 2147483647, %v493_v48  ;;  %v510_v58 = vand.u32 2147483647, %v494_v51  ;;  %v340_v48 = vld [vmem:[%s2327_s14 + $0x38] sm:$0xff]  ;;  %s1694_s14 = scalar_lea.sflag [#allocation3], %s3449_s17 }
  0x8a   : > { %vm525_vm4 = vcmp.le.f32.partialorder %v509_v56, 1.0  ;;  %vm526_vm5 = vcmp.le.f32.partialorder %v510_v58, 1.0 }
  0x8b   : > { %v2380_v14 = vsel %vm525_vm4, 1.0, %v2223_v60  ;;  %v2383_v15 = vsel %vm526_vm5, 1.0, %v2223_v60 }
  0x8e   : > { %1130 = vxpose.xlu2.b32.cont [2/8] (short) (narrow) %v334_v22, 8 }
  0x8f   : > { %v2331_v23 = vpop.permute.xlu2 %364 }
  0x90   : > { %v397_v59 = vsub.f32 %v2331_v23, %v2342_v33  ;;  %v398_v3 = vsub.f32 %v2331_v23, %v2348_v38 }
  0x92   : > { %v413_v6 = vand.u32 2147483647, %v397_v59  ;;  %v2385_v16 = vand.u32 2147483647, %v398_v3 }
  0x94   : > { %vm429_vm8 = vcmp.le.f32.partialorder %v413_v6, 1.0  ;;  %vm430_vm11 = vcmp.le.f32.partialorder %v2385_v16, 1.0 }
  0x95   : > { %v2334_v25 = vpop.permute.xlu1 %354 }
  0x96   : > { %v345_v26 = vpop.permute.xlu0 %344  ;;  %1131 = vxpose.xlu2.b32.cont [3/8] (short) (narrow) %v335_v24, 8  ;;  %v393_v19 = vsub.f32 %v2334_v25, %v2342_v33  ;;  %v394_v24 = vsub.f32 %v2334_v25, %v2348_v38 }
  0x97   : > { %v389_v39 = vsub.f32 %v345_v26, %v2342_v33  ;;  %v390_v44 = vsub.f32 %v345_v26, %v2348_v38 }
  0x98   : > { %v2339_v29 = vpop.permute.xlu2 %470 }
  0x99   : > { %v405_v45 = vand.u32 2147483647, %v389_v39  ;;  %v406_v52 = vand.u32 2147483647, %v390_v44  ;;  %v500_v25 = vsub.f32 %v2339_v29, %v2352_v41 }
  0x9b   : > { %vm421_vm0 = vcmp.le.f32.partialorder %v405_v45, 1.0  ;;  %vm422_vm2 = vcmp.le.f32.partialorder %v406_v52, 1.0  ;;  %v516_v58 = vand.u32 2147483647, %v500_v25 }
  0x9c   : > { %v437_v61 = vsel %vm421_vm0, 1.0, %v2223_v60  ;;  %v438_v7 = vsel %vm422_vm2, 1.0, %v2223_v60 }
  0x9d   : > { %v360_v34 = vpop.permute.xlu1 %359  ;;  %v555_v5 = vmul.f32 %v539_v1, %v437_v61  ;;  %v556_v17 = vmul.f32 %v540_v13, %v438_v7  ;;  %v410_v1 = vand.u32 2147483647, %v394_v24  ;;  %vm532_vm2 = vcmp.le.f32.partialorder %v516_v58, 1.0 }
  0x9e   : > { %1132 = vxpose.xlu2.b32.cont [4/8] (short) (narrow) %v336_v30, 8  ;;  %v2344_v35 = vpop.permute.xlu0 %349  ;;  %v395_v62 = vsub.f32 %v360_v34, %v2342_v33  ;;  %v396_v63 = vsub.f32 %v360_v34, %v2348_v38  ;;  %v499_v30 = vsub.f32 %v2339_v29, %v2346_v37  ;;  %v446_v13 = vsel %vm430_vm11, 1.0, %v2223_v60 }
  0x9f   : > { %v391_v20 = vsub.f32 %v2344_v35, %v2342_v33  ;;  %vm426_vm5 = vcmp.le.f32.partialorder %v410_v1, 1.0 }
  0xa0   : > { %v411_v8 = vand.u32 2147483647, %v395_v62  ;;  %v412_v9 = vand.u32 2147483647, %v396_v63 }
  0xa1   : > { %v2355_v43 = vpop.permute.xlu2 %379  ;;  %v407_v44 = vand.u32 2147483647, %v391_v20  ;;  %v548_v20 = vsel %vm532_vm2, 1.0, %v2223_v60 }
  0xa2   : > { %vm427_vm9 = vcmp.le.f32.partialorder %v411_v8, 1.0  ;;  %vm428_vm10 = vcmp.le.f32.partialorder %v412_v9, 1.0  ;;  %v403_v16 = vsub.f32 %v2355_v43, %v2342_v33 }
  0xa3   : > { %v443_v31 = vsel %vm427_vm9, 1.0, %v2223_v60  ;;  %v444_v39 = vsel %vm428_vm10, 1.0, %v2223_v60  ;;  %vm423_vm12 = vcmp.le.f32.partialorder %v407_v44, 1.0 }
  0xa4   : > { %v439_v3 = vsel %vm423_vm12, 1.0, %v2223_v60 }
  0xa6   : > { %1133 = vxpose.xlu2.b32.cont [5/8] (short) (narrow) %v337_v40, 8  ;;  %v467_v49 = vpop.permute.xlu1 %466  ;;  %v392_v40 = vsub.f32 %v2344_v35, %v2348_v38 }
  0xa7   : > { %v2360_v50 = vpop.permute.xlu0 %462  ;;  %v497_v55 = vsub.f32 %v467_v49, %v2346_v37  ;;  %v498_v57 = vsub.f32 %v467_v49, %v2352_v41  ;;  %v2417_v49 = vand.u32 2147483647, %v393_v19 }
  0xa8   : > { %v408_v59 = vand.u32 2147483647, %v392_v40  ;;  %v495_v61 = vsub.f32 %v2360_v50, %v2346_v37  ;;  %v496_v63 = vsub.f32 %v2360_v50, %v2352_v41 }
  0xa9   : > { %v513_v2 = vand.u32 2147483647, %v497_v55  ;;  %v514_v4 = vand.u32 2147483647, %v498_v57  ;;  %v445_v57 = vsel %vm429_vm8, 1.0, %v2223_v60  ;;  %vm425_vm4 = vcmp.le.f32.partialorder %v2417_v49, 1.0 }
  0xaa   : > { %v574_v0 = vpop.permute.xlu2 %573  ;;  %vm424_vm3 = vcmp.le.f32.partialorder %v408_v59, 1.0  ;;  %v512_v7 = vand.u32 2147483647, %v496_v63  ;;  %v441_v25 = vsel %vm425_vm4, 1.0, %v2223_v60 }
  0xab   : > { %v2375_v10 = vmul.f32 %v574_v0, %v555_v5  ;;  %vm529_vm6 = vcmp.le.f32.partialorder %v513_v2, 1.0  ;;  %vm530_vm7 = vcmp.le.f32.partialorder %v514_v4, 1.0  ;;  %v2392_v22 = vmul.f32 %v574_v0, %v556_v17 }
  0xac   : > { %v545_v21 = vsel %vm529_vm6, 1.0, %v2223_v60  ;;  %v546_v26 = vsel %vm530_vm7, 1.0, %v2223_v60  ;;  %v511_v4 = vand.u32 2147483647, %v495_v61  ;;  %vm528_vm7 = vcmp.le.f32.partialorder %v512_v7, 1.0 }
  0xad   : > { %v627_v23 = vmin.f32 %v2375_v10, 10.0  ;;  %v561_v42 = vmul.f32 %v545_v21, %v443_v31  ;;  %v628_v45 = vmin.f32 %v2392_v22, 10.0  ;;  %v562_v47 = vmul.f32 %v546_v26, %v444_v39 }
  0xae   : > { %1134 = vxpose.xlu2.b32.cont [6/8] (short) (narrow) %v338_v53, 8  ;;  %v515_v53 = vand.u32 2147483647, %v499_v30  ;;  %v440_v21 = vsel %vm424_vm3, 1.0, %v2223_v60  ;;  %vm527_vm6 = vcmp.le.f32.partialorder %v511_v4, 1.0  ;;  %v544_v44 = vsel %vm528_vm7, 1.0, %v2223_v60 }
  0xaf   : > { %v475_v11 = vpop.permute.xlu0 %474  ;;  %v2414_v46 = vadd.f32 1e-05, %v627_v23  ;;  %v2431_v62 = vadd.f32 1e-05, %v628_v45  ;;  %v543_v39 = vsel %vm527_vm6, 1.0, %v2223_v60 }
  0xb0   : > { %v370_v18 = vpop.permute.xlu1 %369  ;;  %v501_v28 = vsub.f32 %v475_v11, %v2346_v37  ;;  %v502_v34 = vsub.f32 %v475_v11, %v2352_v41  ;;  %vm531_vm1 = vcmp.le.f32.partialorder %v515_v53, 1.0  ;;  %v2507_v58 = vmul.f32 %v543_v39, %v441_v25 }
  0xb1   : > { %v399_v27 = vsub.f32 %v370_v18, %v2342_v33  ;;  %v400_v32 = vsub.f32 %v370_v18, %v2348_v38  ;;  %2040 = vrcp.f32 %v2414_v46  ;;  %v547_v19 = vsel %vm531_vm1, 1.0, %v2223_v60 }
  0xb2   : > { %v589_v36 = vpop.permute.xlu2 %588  ;;  %v517_v52 = vand.u32 2147483647, %v501_v28  ;;  %v518_v55 = vand.u32 2147483647, %v502_v34  ;;  %2042 = vrcp.f32 %v2431_v62  ;;  %v404_v34 = vsub.f32 %v2355_v43, %v2348_v38 }
  0xb3   : > { %v415_v51 = vand.u32 2147483647, %v399_v27  ;;  %v2419_v29 = vmul.f32 %v589_v36, %v561_v42  ;;  %v416_v54 = vand.u32 2147483647, %v400_v32  ;;  %v2421_v35 = vmul.f32 %v589_v36, %v562_v47 }
  0xb4   : > { %vm533_vm14 = vcmp.le.f32.partialorder %v517_v52, 1.0  ;;  %vm534_vm0 = vcmp.le.f32.partialorder %v518_v55, 1.0  ;;  %v557_v27 = vmul.f32 %v2380_v14, %v439_v3  ;;  %v558_v14 = vmul.f32 %v2383_v15, %v440_v21 }
  0xb5   : > { %vm431_vm13 = vcmp.le.f32.partialorder %v415_v51, 1.0  ;;  %v3685_v0 = vmin.f32 %v2419_v29, 10.0  ;;  %vm432_vm15 = vcmp.le.f32.partialorder %v416_v54, 1.0  ;;  %v3684_v2 = vmin.f32 %v2421_v35, 10.0 }
  0xb6   : > { %1135 = vxpose.xlu2.b32.cont [7/8] (short) (narrow) %v339_v12, 8  ;;  %v447_v5 = vsel %vm431_vm13, 1.0, %v2223_v60  ;;  %v549_v50 = vsel %vm533_vm14, 1.0, %v2223_v60  ;;  %v448_v8 = vsel %vm432_vm15, 1.0, %v2223_v60  ;;  %v550_v9 = vsel %vm534_vm0, 1.0, %v2223_v60 }
  0xb7   : > { %v2423_v56 = vpop.permute.xlu0 %478  ;;  %v2448_v11 = vadd.f32 1e-05, %v3685_v0  ;;  %v2450_v12 = vpop.eup %2040  ;;  %v2458_v17 = vadd.f32 1e-05, %v3684_v2  ;;  %v565_v24 = vmul.f32 %v549_v50, %v447_v5  ;;  %v566_v26 = vmul.f32 %v550_v9, %v448_v8 }
  0xb8   : > { %v2442_v6 = vpop.permute.xlu1 %374  ;;  %v708_v30 = vmul.f32 %v2450_v12, %v2414_v46  ;;  %v2474_v32 = vpop.eup %2042  ;;  %v442_v42 = vsel %vm426_vm5, 1.0, %v2223_v60  ;;  %v2493_v47 = vmul.f32 %v547_v19, %v445_v57  ;;  %v2498_v51 = vmul.f32 %v548_v20, %v446_v13 }
  0xb9   : > { %2044 = vrcp.f32 %v2448_v11  ;;  %v723_v15 = vmul.f32 %v2474_v32, %v2431_v62  ;;  %v2500_v52 = vand.u32 2147483647, %v403_v16  ;;  %v2502_v53 = vand.u32 2147483647, %v404_v34 }
  0xba   : > { %v599_v18 = vpop.permute.xlu2 %598  ;;  %2046 = vrcp.f32 %v2458_v17  ;;  %vm712_vm8 = vweird.f32 %v2414_v46  ;;  %v716_v59 = vand.u32 2147483647, %v2414_v46  ;;  %v2514_v63 = vmul.f32 %v544_v44, %v442_v42 }
  0xbb   : > { %v2472_v31 = vmul.f32 %v599_v18, %v565_v24  ;;  %v2479_v36 = vmul.f32 %v599_v18, %v566_v26  ;;  %v718_v3 = vand.u32 2147483648, %v2414_v46  ;;  %v401_v4 = vsub.f32 %v2442_v6, %v2342_v33 }
  0xbc   : > { %v503_v5 = vsub.f32 %v2423_v56, %v2346_v37  ;;  %v724_v8 = vsub.f32 1.0, %v723_v15  ;;  %v731_v9 = vand.u32 2147483647, %v2431_v62  ;;  %v402_v33 = vsub.f32 %v2442_v6, %v2348_v38 }
  0xbd   : > { %v3683_v49 = vmin.f32 %v2472_v31, 10.0  ;;  %v3682_v54 = vmin.f32 %v2479_v36, 10.0  ;;  %v504_v19 = vsub.f32 %v2423_v56, %v2352_v41  ;;  %vm2540_vm9 = vcmp.eq.f32.partialorder %v716_v59, 8.507059e+37 }
  0xbe   : > { %1136 = vxpose.xlu2.b32.end [8/8] (short) (narrow) %v340_v48, 8  ;;  %v709_v48 = vsub.f32 1.0, %v708_v30  ;;  %v733_v24 = vand.u32 2147483648, %v2431_v62  ;;  %vm727_vm10 = vweird.f32 %v2431_v62  ;;  %v417_v38 = vand.u32 2147483647, %v401_v4 }
  0xbf   : > { %v2509_v57 = vpop.eup %2044  ;;  %v2528_v13 = vadd.f32 1e-05, %v3683_v49  ;;  %v2538_v20 = vadd.f32 1e-05, %v3682_v54  ;;  %v519_v56 = vand.u32 2147483647, %v503_v5  ;;  %vm713_vm11 = vweird.f32 %v2450_v12 }
  0xc0   : > { %v579_v28 = vpop.permute.xlu0 %578  ;;  %v2516_v1 = vpop.eup %2046  ;;  %v710_v7 = vmul.f32 %v2450_v12, %v709_v48  ;;  %v798_v18 = vmul.f32 %v2509_v57, %v2448_v11  ;;  %v418_v34 = vand.u32 2147483647, %v402_v33  ;;  %v719_v25 = vor.u32 1.1754944e-38, %v718_v3  ;;  %vm2565_vm13 = vmor %vm712_vm8, %vm713_vm11 }
  0xc1   : > { %v2486_v40 = vmul.f32 %v579_v28, %v557_v27  ;;  %v2491_v43 = vmul.f32 %v579_v28, %v558_v14  ;;  %v2505_v55 = vpop.permute.xlu1 %482  ;;  %v813_v16 = vmul.f32 %v2516_v1, %v2458_v17  ;;  %v725_v28 = vmul.f32 %v2474_v32, %v724_v8 }
  0xc2   : > { %v711_v27 = vadd.f32 %v2450_v12, %v710_v7  ;;  %2048 = vrcp.f32 %v2528_v13  ;;  %v799_v30 = vsub.f32 1.0, %v798_v18  ;;  %v520_v14 = vand.u32 2147483647, %v504_v19 }
  0xc3   : > { %v3681_v61 = vmin.f32 %v2486_v40, 10.0  ;;  %v3680_v50 = vmin.f32 %v2491_v43, 10.0  ;;  %2050 = vrcp.f32 %v2538_v20  ;;  %vm728_vm12 = vweird.f32 %v2474_v32 }
  0xc4   : > { %v814_v39 = vsub.f32 1.0, %v813_v16  ;;  %vm2569_vm14 = vcmp.eq.f32.partialorder %v731_v9, 8.507059e+37  ;;  %v808_v48 = vand.u32 2147483648, %v2448_v11  ;;  %vm433_vm15 = vcmp.le.f32.partialorder %v417_v38, 1.0  ;;  %vm2596_vm3 = vmor %vm727_vm10, %vm728_vm12 }
  0xc5   : > { %v2549_v26 = vadd.f32 1e-05, %v3681_v61  ;;  %v2554_v6 = vadd.f32 1e-05, %v3680_v50  ;;  %vm535_vm0 = vcmp.le.f32.partialorder %v519_v56, 1.0  ;;  %v715_v59 = vsel %vm2565_vm13, %v2450_v12, %v711_v27 }
  0xc6   : > { %v726_v46 = vadd.f32 %v2474_v32, %v725_v28  ;;  %v806_v3 = vand.u32 2147483647, %v2448_v11  ;;  %v821_v4 = vand.u32 2147483647, %v2458_v17  ;;  %v800_v5 = vmul.f32 %v2509_v57, %v799_v30 }
  0xc7   : > { %2052 = vrcp.f32 %v2549_v26  ;;  %v823_v7 = vand.u32 2147483648, %v2458_v17  ;;  %vm434_vm1 = vcmp.le.f32.partialorder %v418_v34, 1.0  ;;  %vm536_vm2 = vcmp.le.f32.partialorder %v520_v14, 1.0 }
  0xc8   : > { %2054 = vrcp.f32 %v2554_v6  ;;  %v2583_v8 = vpop.eup %2048  ;;  %v734_v9 = vor.u32 1.1754944e-38, %v733_v24  ;;  %v815_v18 = vmul.f32 %v2516_v1, %v814_v39  ;;  %v449_v33 = vsel %vm433_vm15, 1.0, %v2223_v60 }
  0xc9   : > { %v551_v12 = vsel %vm535_vm0, 1.0, %v2223_v60  ;;  %v2588_v19 = vpop.eup %2050  ;;  %v720_v16 = vsel %vm2540_vm9, %v719_v25, %v715_v59  ;;  %vm802_vm4 = vweird.f32 %v2448_v11  ;;  %v809_v24 = vor.u32 1.1754944e-38, %v808_v48  ;;  %v604_v25 = vpop.permute.xlu0 %603 }
  0xca   : > { %v584_v15 = vpop.permute.xlu1 %583  ;;  %vm817_vm5 = vweird.f32 %v2458_v17  ;;  %v730_v21 = vsel %vm2596_vm3, %v2474_v32, %v726_v46  ;;  %vm2607_vm6 = vcmp.eq.f32.partialorder %v806_v3, 8.507059e+37  ;;  %vm2611_vm7 = vcmp.eq.f32.partialorder %v821_v4, 8.507059e+37 }
  0xcb   : > { %v450_v28 = vsel %vm434_vm1, 1.0, %v2223_v60  ;;  %v552_v30 = vsel %vm536_vm2, 1.0, %v2223_v60  ;;  %v801_v42 = vadd.f32 %v2509_v57, %v800_v5  ;;  %vm803_vm8 = vweird.f32 %v2509_v57 }
  0xcc   : > { %v824_v32 = vor.u32 1.1754944e-38, %v823_v7  ;;  %v567_v48 = vmul.f32 %v551_v12, %v449_v33  ;;  %v816_v59 = vadd.f32 %v2516_v1, %v815_v18  ;;  %vm818_vm9 = vweird.f32 %v2516_v1  ;;  %vm2644_vm10 = vmor %vm802_vm4, %vm803_vm8 }
  0xcd   : > { %v2602_v56 = vpop.eup %2052  ;;  %v858_v34 = vmul.f32 %v2583_v8, %v2528_v13  ;;  %v2628_v46 = vmul.f32 %v584_v15, %v2507_v58  ;;  %v873_v14 = vmul.f32 %v2588_v19, %v2538_v20  ;;  %v568_v4 = vmul.f32 %v552_v30, %v450_v28  ;;  %vm2658_vm11 = vmor %vm817_vm5, %vm818_vm9 }
  0xce   : > { %v2619_v39 = vpop.eup %2054  ;;  %v738_v3 = vmul.f32 %v2602_v56, %v2549_v26  ;;  %v2634_v5 = vmul.f32 %v604_v25, %v567_v48  ;;  %v2636_v7 = vmul.f32 100.0, %v720_v16  ;;  %v2640_v18 = vsel %vm2569_vm14, %v734_v9, %v730_v21 }
  0xcf   : > { %v753_v33 = vmul.f32 %v2619_v39, %v2554_v6  ;;  %v2651_v12 = vmul.f32 %v584_v15, %v2514_v63  ;;  %v805_v16 = vsel %vm2644_vm10, %v2509_v57, %v801_v42  ;;  %v505_v11 = vsub.f32 %v2505_v55, %v2346_v37 }
  0xd0   : > { %v506_v9 = vsub.f32 %v2505_v55, %v2352_v41  ;;  %v2666_v38 = vmul.f32 %v604_v25, %v568_v4  ;;  %v820_v15 = vsel %vm2658_vm11, %v2516_v1, %v816_v59  ;;  %v859_v57 = vsub.f32 1.0, %v858_v34 }
  0xd1   : > { %v868_v17 = vand.u32 2147483648, %v2528_v13  ;;  %v3679_v21 = vmin.f32 %v2628_v46, 10.0  ;;  %vm862_vm12 = vweird.f32 %v2528_v13  ;;  %v874_v28 = vsub.f32 1.0, %v873_v14 }
  0xd2   : > { %v594_v63 = vpop.permute.xlu1 %593  ;;  %v739_v30 = vsub.f32 1.0, %v738_v3  ;;  %v3676_v42 = vmin.f32 %v2634_v5, 10.0  ;;  %v866_v48 = vand.u32 2147483647, %v2528_v13  ;;  %v754_v25 = vsub.f32 1.0, %v753_v33 }
  0xd3   : > { %v3677_v4 = vmin.f32 %v2651_v12, 10.0  ;;  %v2678_v58 = vmul.f32 %v594_v63, %v2493_v47  ;;  %v2682_v1 = vsel %vm2607_vm6, %v809_v24, %v805_v16  ;;  %v2686_v59 = vsel %vm2611_vm7, %v824_v32, %v820_v15 }
  0xd4   : > { %vm877_vm13 = vweird.f32 %v2538_v20  ;;  %v3674_v34 = vmin.f32 %v2666_v38, 10.0  ;;  %v860_v14 = vmul.f32 %v2583_v8, %v859_v57  ;;  %v869_v3 = vor.u32 1.1754944e-38, %v868_v17 }
  0xd5   : > { %v881_v33 = vand.u32 2147483647, %v2538_v20  ;;  %v2694_v47 = vadd.f32 1e-05, %v3679_v21  ;;  %v875_v24 = vmul.f32 %v2588_v19, %v874_v28  ;;  %v740_v27 = vmul.f32 %v2602_v56, %v739_v30 }
  0xd6   : > { %v2700_v62 = vadd.f32 1e-05, %v3676_v42  ;;  %v2703_v32 = vmul.f32 %v594_v63, %v2498_v51  ;;  %vm2705_vm14 = vcmp.eq.f32.partialorder %v866_v48, 8.507059e+37  ;;  %v883_v44 = vand.u32 2147483648, %v2538_v20 }
  0xd7   : > { %v755_v15 = vmul.f32 %v2619_v39, %v754_v25  ;;  %v2713_v57 = vadd.f32 1e-05, %v3677_v4  ;;  %v3675_v17 = vmin.f32 %v2678_v58, 10.0  ;;  %vm863_vm15 = vweird.f32 %v2583_v8 }
  0xd8   : > { %vm742_vm0 = vweird.f32 %v2549_v26  ;;  %v748_v51 = vand.u32 2147483648, %v2549_v26  ;;  %v2721_v63 = vadd.f32 1e-05, %v3674_v34  ;;  %v861_v28 = vadd.f32 %v2583_v8, %v860_v14  ;;  %vm2733_vm3 = vmor %vm862_vm12, %vm863_vm15 }
  0xd9   : > { %vm878_vm1 = vweird.f32 %v2588_v19  ;;  %vm743_vm2 = vweird.f32 %v2602_v56  ;;  %2056 = vrcp.f32 %v2694_v47  ;;  %v876_v30 = vadd.f32 %v2588_v19, %v875_v24 }
  0xda   : > { %v741_v48 = vadd.f32 %v2602_v56, %v740_v27  ;;  %2058 = vrcp.f32 %v2700_v62  ;;  %v3678_v25 = vmin.f32 %v2703_v32, 10.0  ;;  %v756_v14 = vadd.f32 %v2619_v39, %v755_v15  ;;  %vm2747_vm6 = vmor %vm877_vm13, %vm878_vm1 }
  0xdb   : > { %vm758_vm4 = vweird.f32 %v2619_v39  ;;  %2060 = vrcp.f32 %v2713_v57  ;;  %v2742_v24 = vadd.f32 1e-05, %v3675_v17  ;;  %vm435_vm5 = vcmp.le.f32.partialorder %v2500_v52, 1.0  ;;  %vm2763_vm9 = vmor %vm742_vm0, %vm743_vm2 }
  0xdc   : > { %v746_v27 = vand.u32 2147483647, %v2549_v26  ;;  %vm757_vm7 = vweird.f32 %v2554_v6  ;;  %v763_v15 = vand.u32 2147483648, %v2554_v6  ;;  %2062 = vrcp.f32 %v2721_v63 }
  0xdd   : > { %vm436_vm8 = vcmp.le.f32.partialorder %v2502_v53, 1.0  ;;  %v865_v17 = vsel %vm2733_vm3, %v2583_v8, %v861_v28  ;;  %v761_v42 = vand.u32 2147483647, %v2554_v6  ;;  %v2770_v4 = vadd.f32 1e-05, %v3678_v25  ;;  %vm2785_vm11 = vmor %vm757_vm7, %vm758_vm4 }
  0xde   : > { %2064 = vrcp.f32 %v2742_v24  ;;  %v880_v8 = vsel %vm2747_vm6, %v2588_v19, %v876_v30  ;;  %vm2776_vm10 = vcmp.eq.f32.partialorder %v881_v33, 8.507059e+37  ;;  %v745_v26 = vsel %vm2763_vm9, %v2602_v56, %v741_v48 }
  0xdf   : > { %v521_v28 = vand.u32 2147483647, %v505_v11  ;;  %v2792_v13 = vpop.eup %2056  ;;  %v884_v19 = vor.u32 1.1754944e-38, %v883_v44  ;;  %v749_v33 = vor.u32 1.1754944e-38, %v748_v51  ;;  %v760_v30 = vsel %vm2785_vm11, %v2619_v39, %v756_v14 }
  0xe0   : > { %v522_v56 = vand.u32 2147483647, %v506_v9  ;;  %v2800_v48 = vpop.eup %2058  ;;  %v870_v20 = vsel %vm2705_vm14, %v869_v3, %v865_v17  ;;  %vm747_vm12 = vcmp.eq.f32.partialorder %v746_v27, 8.507059e+37  ;;  %v764_v37 = vor.u32 1.1754944e-38, %v763_v15 }
  0xe1   : > { %2066 = vrcp.f32 %v2770_v4  ;;  %v2805_v11 = vpop.eup %2060  ;;  %v2808_v44 = vmul.f32 100.0, %v2640_v18  ;;  %v885_v39 = vsel %vm2776_vm10, %v884_v19, %v880_v8  ;;  %v750_v51 = vsel %vm747_vm12, %v749_v33, %v745_v26 }
  0xe2   : > { %vm762_vm13 = vcmp.eq.f32.partialorder %v761_v42, 8.507059e+37  ;;  %v2812_v41 = vpop.eup %2062  ;;  %v2815_v55 = vmul.f32 100.0, %v2682_v1  ;;  %vm537_vm14 = vcmp.le.f32.partialorder %v521_v28, 1.0  ;;  %v768_v3 = vmul.f32 %v2792_v13, %v2694_v47 }
  0xe3   : > { %v765_v9 = vsel %vm762_vm13, %v764_v37, %v760_v30  ;;  %v2822_v18 = vmul.f32 100.0, %v2686_v59  ;;  %v2824_v17 = vmul.f32 100.0, %v870_v20  ;;  %vm538_vm15 = vcmp.le.f32.partialorder %v522_v56, 1.0 }
  0xe4   : > { %v2819_v16 = vpop.eup %2064  ;;  %v898_v42 = vand.u32 2147483648, %v2700_v62  ;;  %v2827_v14 = vmul.f32 100.0, %v885_v39  ;;  %v2829_v27 = vmul.f32 100.0, %v750_v51  ;;  %v783_v1 = vmul.f32 %v2805_v11, %v2713_v57  ;;  %v609_v39 = vpop.permute.xlu1 %608 }
  0xe5   : > { %v828_v15 = vmul.f32 %v2819_v16, %v2742_v24  ;;  %v2835_v8 = vmul.f32 100.0, %v765_v9  ;;  %v888_v59 = vmul.f32 %v2800_v48, %v2700_v62  ;;  %v903_v34 = vmul.f32 %v2812_v41, %v2721_v63 }
  0xe6   : > { %v553_v26 = vsel %vm537_vm14, 1.0, %v2223_v60  ;;  %v896_v28 = vand.u32 2147483647, %v2700_v62  ;;  %v911_v19 = vand.u32 2147483647, %v2721_v63  ;;  %v769_v33 = vsub.f32 1.0, %v768_v3 }
  0xe7   : > { %v2842_v6 = vpop.eup %2066  ;;  %v554_v30 = vsel %vm538_vm15, 1.0, %v2223_v60  ;;  %vm892_vm0 = vweird.f32 %v2700_v62  ;;  %v2848_v56 = vor.u32 1.1754944e-38, %v898_v42  ;;  %v913_v20 = vand.u32 2147483648, %v2721_v63 }
  0xe8   : > { %v843_v37 = vmul.f32 %v2842_v6, %v2770_v4  ;;  %v451_v51 = vsel %vm435_vm5, 1.0, %v2223_v60  ;;  %v784_v9 = vsub.f32 1.0, %v783_v1  ;;  %v829_v25 = vsub.f32 1.0, %v828_v15 }
  0xe9   : > { %v452_v3 = vsel %vm436_vm8, 1.0, %v2223_v60  ;;  %v569_v21 = vmul.f32 %v553_v26, %v451_v51  ;;  %v889_v50 = vsub.f32 1.0, %v888_v59  ;;  %v904_v42 = vsub.f32 1.0, %v903_v34 }
  0xea   : > { %vm772_vm1 = vweird.f32 %v2694_v47  ;;  %v570_v61 = vmul.f32 %v554_v30, %v452_v3  ;;  %v770_v54 = vmul.f32 %v2792_v13, %v769_v33  ;;  %v776_v49 = vand.u32 2147483647, %v2694_v47 }
  0xeb   : > { %v844_v2 = vsub.f32 1.0, %v843_v37  ;;  %v2862_v0 = vmul.f32 %v609_v39, %v569_v21  ;;  %vm893_vm2 = vweird.f32 %v2800_v48  ;;  %vm907_vm3 = vweird.f32 %v2721_v63 }
  0xec   : > { %v778_v52 = vand.u32 2147483648, %v2694_v47  ;;  %vm787_vm4 = vweird.f32 %v2713_v57  ;;  %v2868_v60 = vmul.f32 %v609_v39, %v570_v61  ;;  %v785_v53 = vmul.f32 %v2805_v11, %v784_v9  ;;  %vm2900_vm10 = vmor %vm892_vm0, %vm893_vm2 }
  0xed   : > { %v791_v1 = vand.u32 2147483647, %v2713_v57  ;;  %v830_v15 = vmul.f32 %v2819_v16, %v829_v25  ;;  %v641_v59 = vmin.f32 %v2862_v0, 10.0  ;;  %v890_v21 = vmul.f32 %v2800_v48, %v889_v50 }
  0xee   : > { %v905_v34 = vmul.f32 %v2812_v41, %v904_v42  ;;  %v793_v26 = vand.u32 2147483648, %v2713_v57  ;;  %v642_v33 = vmin.f32 %v2868_v60, 10.0  ;;  %v771_v30 = vadd.f32 %v2792_v13, %v770_v54 }
  0xef   : > { %vm773_vm5 = vweird.f32 %v2792_v13  ;;  %v845_v61 = vmul.f32 %v2842_v6, %v844_v2  ;;  %v2883_v37 = vadd.f32 1e-05, %v641_v59  ;;  %vm2885_vm6 = vcmp.eq.f32.partialorder %v896_v28, 8.507059e+37 }
  0xf0   : > { %vm908_vm7 = vweird.f32 %v2812_v41  ;;  %vm788_vm8 = vweird.f32 %v2805_v11  ;;  %vm832_vm9 = vweird.f32 %v2742_v24  ;;  %v2894_v54 = vadd.f32 1e-05, %v642_v33  ;;  %vm2914_vm12 = vmor %vm772_vm1, %vm773_vm5 }
  0xf1   : > { %v786_v50 = vadd.f32 %v2805_v11, %v785_v53  ;;  %v831_v28 = vadd.f32 %v2819_v16, %v830_v15  ;;  %vm833_vm11 = vweird.f32 %v2819_v16  ;;  %2068 = vrcp.f32 %v2883_v37  ;;  %vm2925_vm13 = vmor %vm787_vm4, %vm788_vm8 }
  0xf2   : > { %v891_v39 = vadd.f32 %v2800_v48, %v890_v21  ;;  %v906_v51 = vadd.f32 %v2812_v41, %v905_v34  ;;  %v836_v9 = vand.u32 2147483647, %v2742_v24  ;;  %v838_v3 = vand.u32 2147483648, %v2742_v24  ;;  %vm2936_vm0 = vmor %vm832_vm9, %vm833_vm11 }
  0xf3   : > { %v775_v42 = vsel %vm2914_vm12, %v2792_v13, %v771_v30  ;;  %v846_v47 = vadd.f32 %v2842_v6, %v845_v61  ;;  %vm848_vm14 = vweird.f32 %v2842_v6  ;;  %2070 = vrcp.f32 %v2894_v54  ;;  %vm2945_vm1 = vmor %vm907_vm3, %vm908_vm7 }
  0xf4   : > { %v914_v15 = vor.u32 1.1754944e-38, %v913_v20  ;;  %vm777_vm15 = vcmp.eq.f32.partialorder %v776_v49, 8.507059e+37  ;;  %v779_v21 = vor.u32 1.1754944e-38, %v778_v52  ;;  %v853_v57 = vand.u32 2147483648, %v2770_v4 }
  0xf5   : > { %v790_v49 = vsel %vm2925_vm13, %v2805_v11, %v786_v50  ;;  %v835_v24 = vsel %vm2936_vm0, %v2819_v16, %v831_v28  ;;  %vm847_vm2 = vweird.f32 %v2770_v4  ;;  %v851_v20 = vand.u32 2147483647, %v2770_v4 }
  0xf6   : > { %v895_v52 = vsel %vm2900_vm10, %v2800_v48, %v891_v39  ;;  %v780_v30 = vsel %vm777_vm15, %v779_v21, %v775_v42  ;;  %v794_v61 = vor.u32 1.1754944e-38, %v793_v26  ;;  %v839_v62 = vor.u32 1.1754944e-38, %v838_v3  ;;  %vm2962_vm3 = vmor %vm847_vm2, %vm848_vm14 }
  0xf7   : > { %v2069_v11 = vpop.eup %2068  ;;  %v910_v16 = vsel %vm2945_vm1, %v2812_v41, %v906_v51  ;;  %vm792_vm4 = vcmp.eq.f32.partialorder %v791_v1, 8.507059e+37  ;;  %vm837_vm5 = vcmp.eq.f32.partialorder %v836_v9, 8.507059e+37  ;;  %v850_v4 = vsel %vm2962_vm3, %v2842_v6, %v846_v47 }
  0xf8   : > { %v795_v48 = vsel %vm792_vm4, %v794_v61, %v790_v49  ;;  %v840_v26 = vsel %vm837_vm5, %v839_v62, %v835_v24  ;;  %v854_v2 = vor.u32 1.1754944e-38, %v853_v57  ;;  %v918_v50 = vmul.f32 %v2069_v11, %v2883_v37 }
  0xf9   : > { %v2071_v28 = vpop.eup %2070  ;;  %v900_v39 = vsel %vm2885_vm6, %v2848_v56, %v895_v52  ;;  %vm912_vm7 = vcmp.eq.f32.partialorder %v911_v19, 8.507059e+37  ;;  %v2978_v41 = vmul.f32 100.0, %v780_v30  ;;  %vm852_vm8 = vcmp.eq.f32.partialorder %v851_v20, 8.507059e+37 }
  0xfa   : > { %v915_v1 = vsel %vm912_vm7, %v914_v15, %v910_v16  ;;  %v855_v51 = vsel %vm852_vm8, %v854_v2, %v850_v4  ;;  %v919_v9 = vsub.f32 1.0, %v918_v50  ;;  %v933_v6 = vmul.f32 %v2071_v28, %v2894_v54 }
  0xfb   : > { %v2981_v3 = vmul.f32 100.0, %v795_v48  ;;  %v2983_v42 = vmul.f32 100.0, %v840_v26  ;;  %v928_v47 = vand.u32 2147483648, %v2883_v37  ;;  %v948_v56 = vmax.f32 %v2829_v27, %v2815_v55 }
  0xfc   : > { %v920_v25 = vmul.f32 %v2069_v11, %v919_v9  ;;  %vm923_vm6 = vweird.f32 %v2069_v11  ;;  %v926_v63 = vand.u32 2147483647, %v2883_v37  ;;  %v934_v19 = vsub.f32 1.0, %v933_v6 }
  0xfd   : > { %v947_v15 = vmax.f32 %v2636_v7, %v2978_v41  ;;  %v2991_v21 = vmul.f32 100.0, %v855_v51  ;;  %vm922_vm9 = vweird.f32 %v2883_v37  ;;  %v943_v13 = vand.u32 2147483648, %v2894_v54 }
  0xfe   : > { %v921_v57 = vadd.f32 %v2069_v11, %v920_v25  ;;  %v935_v34 = vmul.f32 %v2071_v28, %v934_v19  ;;  %vm938_vm10 = vweird.f32 %v2071_v28  ;;  %v941_v49 = vand.u32 2147483647, %v2894_v54  ;;  %vm924_vm11 = vmor %vm922_vm9, %vm923_vm6 }
  0xff   : > { %v960_v24 = vmax.f32 %v2808_v44, %v2981_v3  ;;  %v949_v20 = vmax.f32 %v947_v15, %v2983_v42  ;;  %v929_v52 = vor.u32 1.1754944e-38, %v928_v47  ;;  %v961_v30 = vmax.f32 %v2835_v8, %v2822_v18 }
 0x100   : > { %v925_v61 = vsel %vm924_vm11, %v2069_v11, %v921_v57  ;;  %vm927_vm12 = vcmp.eq.f32.partialorder %v926_v63, 8.507059e+37  ;;  %v936_v37 = vadd.f32 %v2071_v28, %v935_v34  ;;  %vm937_vm13 = vweird.f32 %v2894_v54 }
 0x101   : > { %v3002_v62 = vmul.f32 100.0, %v900_v39  ;;  %v930_v53 = vsel %vm927_vm12, %v929_v52, %v925_v61  ;;  %vm939_vm14 = vmor %vm937_vm13, %vm938_vm10  ;;  %v944_v16 = vor.u32 1.1754944e-38, %v943_v13  ;;  %v950_v4 = vmax.f32 %v948_v56, %v2824_v17 }
 0x102   : > { %v962_v48 = vmax.f32 %v960_v24, %v2991_v21  ;;  %v3006_v26 = vmul.f32 100.0, %v930_v53  ;;  %v940_v2 = vsel %vm939_vm14, %v2071_v28, %v936_v37  ;;  %vm942_vm15 = vcmp.eq.f32.partialorder %v941_v49, 8.507059e+37 }
 0x103   : > { %v3008_v50 = vmul.f32 100.0, %v915_v1  ;;  %v945_v11 = vsel %vm942_vm15, %v944_v16, %v940_v2  ;;  %v951_v54 = vmax.f32 %v949_v20, %v3002_v62  ;;  %v963_v9 = vmax.f32 %v961_v30, %v2827_v14 }
 0x104   : > { %v3010_v51 = vmul.f32 100.0, %v945_v11  ;;  %v952_v39 = vmax.f32 %v950_v4, %v3006_v26  ;;  %vm643_vm0 = vcmp.ne.f32.partialorder %v627_v23, 10.0  ;;  %vm644_vm1 = vcmp.ne.f32.partialorder %v628_v45, 10.0 }
 0x105   : > { %v964_v47 = vmax.f32 %v962_v48, %v3008_v50  ;;  %v3756_v52 = vmin.f32 %v2419_v29, 10.0  ;;  %v3757_v30 = vmin.f32 %v2421_v35, 10.0  ;;  %v3686_v23 = vmov 0.0  }
 0x106   : > { %v953_v6 = vmax.f32 %v951_v54, %v952_v39  ;;  %v965_v56 = vmax.f32 %v963_v9, %v3010_v51  ;;  %v1931_v22 = vsel %vm643_vm0, 1.0, %v3686_v23  ;;  %v1932_v45 = vsel %vm644_vm1, 1.0, %v3686_v23 }
 0x107   : > { %vm649_vm2 = vcmp.ne.f32.partialorder %v3756_v52, 10.0  ;;  %vm650_vm3 = vcmp.ne.f32.partialorder %v3757_v30, 10.0  ;;  %v3758_v53 = vmin.f32 %v2472_v31, 10.0  ;;  %v3759_v29 = vmin.f32 %v2479_v36, 10.0 }
 0x108   : > { %v954_v25 = vrot.slane %v953_v6, 4  ;;  %v966_v63 = vmax.f32 %v964_v47, %v965_v56  ;;  %v3046_v16 = vsel %vm649_vm2, 1.0, %v3686_v23  ;;  %v3049_v4 = vsel %vm650_vm3, 1.0, %v3686_v23 }
 0x109   : > { %vm653_vm4 = vcmp.ne.f32.partialorder %v3758_v53, 10.0  ;;  %vm654_vm5 = vcmp.ne.f32.partialorder %v3759_v29, 10.0  ;;  %v3760_v31 = vmin.f32 %v2486_v40, 10.0  ;;  %v3761_v39 = vmin.f32 %v2491_v43, 10.0 }
 0x10a   : > { %v955_v28 = vmax.f32 %v953_v6, %v954_v25  ;;  %v967_v19 = vrot.slane %v966_v63, 4  ;;  %v3061_v11 = vsel %vm654_vm5, 1.0, %v3686_v23  ;;  %v3770_v30 = vmin.f32 %v2678_v58, 10.0 }
 0x10b   : > { %vm645_vm7 = vcmp.ne.f32.partialorder %v3760_v31, 10.0  ;;  %vm3067_vm8 = vcmp.ne.f32.partialorder %v3761_v39, 10.0  ;;  %vm3167_vm14 = vcmp.ne.f32.partialorder %v641_v59, 10.0  ;;  %vm3178_vm15 = vcmp.ne.f32.partialorder %v642_v33, 10.0 }
 0x10c   : > { %v956_v1 = vrot.slane %v955_v28, 2  ;;  %v968_v15 = vmax.f32 %v966_v63, %v967_v19  ;;  %v1933_v6 = vsel %vm645_vm7, 1.0, %v3686_v23  ;;  %v3765_v63 = vmin.f32 %v2651_v12, 10.0 }
 0x10d   : > { %vm3112_vm11 = vcmp.ne.f32.partialorder %v3770_v30, 10.0  ;;  %vm1161_vm0 = vcmask 523264   ;;  %vm1653_vm2 = vcmask 1040384  }
 0x10e   : > { %v957_v13 = vmax.f32 %v955_v28, %v956_v1  ;;  %v969_v57 = vrot.slane %v968_v15, 2  ;;  %vm648_vm9 = vcmp.ne.f32.partialorder %v3765_v63, 10.0  ;;  %v1939_v39 = vsel %vm3112_vm11, 1.0, %v3686_v23 }
 0x110   : > { %v958_v34 = vrot.slane %v957_v13, 1  ;;  %v970_v49 = vmax.f32 %v968_v15, %v969_v57  ;;  %v1936_v57 = vsel %vm648_vm9, 1.0, %v3686_v23 }
 0x112   : > { %v3021_v24 = vmax.f32 %v957_v13, %v958_v34  ;;  %v971_v20 = vrot.slane %v970_v49, 1 }
 0x114   : > { %v3027_v61 = vmax.f32 %v970_v49, %v971_v20  ;;  %v973_v37 = vsub.f32 %v2636_v7, %v3021_v24  ;;  %v975_v10 = vsub.f32 %v2829_v27, %v3021_v24  ;;  %v977_v27 = vsub.f32 %v2978_v41, %v3021_v24 }
 0x115   : > { %v3058_v41 = vsel %vm653_vm4, 1.0, %v3686_v23  ;;  %v983_v43 = vsub.f32 %v2824_v17, %v3021_v24 }
 0x116   : > { %v974_v35 = vsub.f32 %v2808_v44, %v3027_v61  ;;  %v976_v7 = vsub.f32 %v2835_v8, %v3027_v61  ;;  %v978_v36 = vsub.f32 %v2981_v3, %v3027_v61  ;;  %v979_v44 = vsub.f32 %v2815_v55, %v3021_v24 }
 0x117   : > { %v989_v48 = vmul.f32 1.442695, %v973_v37  ;;  %v993_v2 = vmul.f32 1.442695, %v975_v10  ;;  %v980_v54 = vsub.f32 %v2822_v18, %v3027_v61  ;;  %v981_v55 = vsub.f32 %v2983_v42, %v3021_v24 }
 0x118   : > { %v991_v8 = vmul.f32 1.442695, %v974_v35  ;;  %v995_v40 = vmul.f32 1.442695, %v976_v7  ;;  %v997_v9 = vmul.f32 1.442695, %v977_v27  ;;  %v982_v47 = vsub.f32 %v2991_v21, %v3027_v61 }
 0x119   : > { %2072 = vpow2.f32 %v989_v48  ;;  %v999_v56 = vmul.f32 1.442695, %v978_v36  ;;  %v3764_v18 = vmin.f32 %v2628_v46, 10.0  ;;  %v1001_v25 = vmul.f32 1.442695, %v979_v44 }
 0x11a   : > { %2074 = vpow2.f32 %v991_v8  ;;  %v984_v42 = vsub.f32 %v2827_v14, %v3027_v61  ;;  %v1003_v28 = vmul.f32 1.442695, %v980_v54  ;;  %v1934_v21 = vsel %vm3067_vm8, 1.0, %v3686_v23 }
 0x11b   : > { %vm647_vm6 = vcmp.ne.f32.partialorder %v3764_v18, 10.0  ;;  %2076 = vpow2.f32 %v993_v2  ;;  %v985_v46 = vsub.f32 %v3002_v62, %v3021_v24  ;;  %v1005_v19 = vmul.f32 1.442695, %v981_v55 }
 0x11c   : > { %2078 = vpow2.f32 %v995_v40  ;;  %v1935_v17 = vsel %vm647_vm6, 1.0, %v3686_v23  ;;  %v986_v12 = vsub.f32 %v3008_v50, %v3027_v61  ;;  %v1007_v1 = vmul.f32 1.442695, %v982_v47 }
 0x11d   : > { %2080 = vpow2.f32 %v997_v9  ;;  %v3766_v14 = vmin.f32 %v2634_v5, 10.0  ;;  %v987_v62 = vsub.f32 %v3006_v26, %v3021_v24  ;;  %v1009_v34 = vmul.f32 1.442695, %v983_v43 }
 0x11e   : > { %2082 = vpow2.f32 %v999_v56  ;;  %v988_v50 = vsub.f32 %v3010_v51, %v3027_v61  ;;  %v1011_v20 = vmul.f32 1.442695, %v984_v42  ;;  %v1013_v26 = vmul.f32 1.442695, %v985_v46 }
 0x11f   : > { %v3092_v15 = vpop.eup %2072  ;;  %vm3096_vm10 = vcmp.ne.f32.partialorder %v3766_v14, 10.0  ;;  %2084 = vpow2.f32 %v1001_v25  ;;  %v3773_v51 = vmin.f32 %v2703_v32, 10.0  ;;  %v1017_v29 = vmul.f32 1.442695, %v987_v62  ;;  %v1145_v33 = vpop.trf.xlu2 }
 0x120   : > { %v2075_v49 = vpop.eup %2074  ;;  %2086 = vpow2.f32 %v1003_v28  ;;  %v3106_v52 = vmul.f32 %v3092_v15, %v1931_v22  ;;  %v1015_v22 = vmul.f32 1.442695, %v986_v12  ;;  %v1019_v27 = vmul.f32 1.442695, %v988_v50 }
 0x121   : > { %v3108_v5 = vpop.eup %2076  ;;  %2088 = vpow2.f32 %v1005_v19  ;;  %v3116_v24 = vmul.f32 %v2075_v49, %v1932_v45  ;;  %vm3120_vm12 = vcmp.ne.f32.partialorder %v3773_v51, 10.0  ;;  %v3778_v54 = vmin.f32 %v2666_v38, 10.0 }
 0x122   : > { %3769 = vst [vmem:[#allocation8_spill] sm:$0xff] %v3106_v52  ;;  %v2079_v10 = vpop.eup %2078  ;;  %2090 = vpow2.f32 %v1007_v1  ;;  %v3125_v53 = vmul.f32 %v3108_v5, %v1933_v6  ;;  %v1940_v56 = vsel %vm3120_vm12, 1.0, %v3686_v23  ;;  %v1943_v42 = vsel %vm3096_vm10, 1.0, %v3686_v23 }
 0x123   : > { %v3127_v58 = vpop.eup %2080  ;;  %2092 = vpow2.f32 %v1009_v34  ;;  %v3129_v35 = vmul.f32 %v2079_v10, %v1934_v21  ;;  %v1050_v45 = vadd.f32 %v2079_v10, %v2075_v49  ;;  %vm3144_vm13 = vcmp.ne.f32.partialorder %v3778_v54, 10.0 }
 0x124   : > { %3776 = vst [vmem:[#allocation9_spill] sm:$0xff] %v3125_v53  ;;  %v2083_v7 = vpop.eup %2082  ;;  %2094 = vpow2.f32 %v1011_v20  ;;  %v3132_v32 = vmul.f32 %v3127_v58, %v1935_v17  ;;  %v1063_v31 = vadd.f32 %v3125_v53, %v3106_v52  ;;  %v1944_v46 = vsel %vm3144_vm13, 1.0, %v3686_v23 }
 0x125   : > { %v3136_v36 = vpop.eup %2084  ;;  %2096 = vpow2.f32 %v1013_v26  ;;  %v3138_v44 = vmul.f32 %v2083_v7, %v1936_v57  ;;  %v1051_v48 = vadd.f32 %v2083_v7, %v1050_v45  ;;  %v1076_v8 = vadd.f32 %v3129_v35, %v3116_v24 }
 0x126   : > { %3777 = vst [vmem:[#allocation10_spill] sm:$0xff] %v3132_v32  ;;  %v2087_v2 = vpop.eup %2086  ;;  %2098 = vpow2.f32 %v1015_v22  ;;  %v1064_v3 = vadd.f32 %v1063_v31, %v3132_v32  ;;  %v3156_v9 = vmul.f32 %v3136_v36, %v3046_v16  ;;  %v1945_v1 = vsel %vm3167_vm14, 1.0, %v3686_v23 }
 0x127   : > { %v3152_v55 = vpop.eup %2088  ;;  %2100 = vpow2.f32 %v1017_v29  ;;  %v3159_v38 = vmul.f32 %v2087_v2, %v3049_v4  ;;  %v1077_v6 = vadd.f32 %v1076_v8, %v3138_v44  ;;  %v1052_v63 = vadd.f32 %v2087_v2, %v1051_v48 }
 0x128   : > { %3781 = vst [vmem:[#allocation11_spill] sm:$0xff] %v3156_v9  ;;  %v2091_v47 = vpop.eup %2090  ;;  %2102 = vpow2.f32 %v1019_v27  ;;  %v3172_v16 = vmul.f32 %v3152_v55, %v1939_v39  ;;  %v1065_v60 = vadd.f32 %v1064_v3, %v3156_v9  ;;  %v3203_v12 = vand.u32 4294901760, %v3156_v9 }
 0x129   : > { %v3174_v43 = vpop.eup %2092  ;;  %v3182_v25 = vmul.f32 %v2091_v47, %v1940_v56  ;;  %v1078_v0 = vadd.f32 %v1077_v6, %v3159_v38  ;;  %v1946_v14 = vsel %vm3178_vm15, 1.0, %v3686_v23  ;;  %v1053_v49 = vadd.f32 %v2091_v47, %v1052_v63 }
 0x12a   : > { %3784 = vst [vmem:[#allocation12_spill] sm:$0xff] %v3172_v16  ;;  %v2095_v59 = vpop.eup %2094  ;;  %v3190_v28 = vmul.f32 %v3174_v43, %v3058_v41  ;;  %v3200_v17 = vand.u32 4294901760, %v3172_v16  ;;  %v3223_v50 = vand.u32 4294901760, %v3125_v53  ;;  %v1163_v20 = vsel %vm1161_vm0, %v1145_v33, 0 }
 0x12b   : > { %v3193_v21 = vpop.eup %2096  ;;  %v1079_v19 = vadd.f32 %v1078_v0, %v3182_v25  ;;  %v3220_v34 = vmul.f32 %v2095_v59, %v3061_v11  ;;  %v1066_v26 = vadd.f32 %v1065_v60, %v3172_v16  ;;  %v3234_v51 = vand.u32 4294901760, %v3132_v32 }
 0x12c   : > { %3787 = vst [vmem:[#allocation13_spill] sm:$0xff] %v3190_v28  ;;  %v2099_v41 = vpop.eup %2098  ;;  %v3212_v13 = vmul.f32 %v3193_v21, %v1943_v42  ;;  %v3215_v57 = vand.u32 4294901760, %v3190_v28  ;;  %v3241_v22 = vsub.f32 %v3172_v16, %v3200_v17  ;;  %v3245_v29 = vsub.f32 %v3156_v9, %v3203_v12 }
 0x12d   : > { %v3217_v62 = vpop.eup %2100  ;;  %3789 = vst [vmem:[#allocation15_spill] sm:$0xff] %v3220_v34  ;;  %v1080_v61 = vadd.f32 %v1079_v19, %v3220_v34  ;;  %v3247_v45 = vmul.f32 %v2099_v41, %v1944_v46  ;;  %v1054_v48 = vadd.f32 %v2095_v59, %v1053_v49  ;;  %v3263_v2 = vand.u32 4294901760, %v1163_v20 }
 0x12e   : > { %3788 = vst [vmem:[#allocation14_spill] sm:$0xff] %v3212_v13  ;;  %v2103_v30 = vpop.eup %2102  ;;  %v3227_v37 = vmul.f32 %v3217_v62, %v1945_v1  ;;  %v3231_v10 = vand.u32 4294901760, %v3212_v13  ;;  %v3258_v31 = vsub.f32 %v3190_v28, %v3215_v57  ;;  %v3266_v54 = vand.u32 4294901760, %v3106_v52 }
 0x12f   : > { %v3236_v11 = vmul.f32 %v2103_v30, %v1946_v14  ;;  %3792 = vst [vmem:[#allocation18_spill] sm:$0xff] %v3247_v45  ;;  %v3277_v3 = vsub.f32 %v3132_v32, %v3234_v51  ;;  %v3281_v6 = vsub.f32 %v3125_v53, %v3223_v50  ;;  %v1067_v47 = vadd.f32 %v1066_v26, %v3190_v28 }
 0x130   : > { %3790 = vst [vmem:[#allocation16_spill] sm:$0xff] %v3227_v37  ;;  %v3250_v7 = vand.u32 4294901760, %v3227_v37  ;;  %v3254_v27 = vsub.f32 %v3212_v13, %v3231_v10  ;;  %v1081_v56 = vadd.f32 %v1080_v61, %v3247_v45  ;;  %v3690_v18 = vand.u32 4294901760, %v3241_v22 }
 0x131   : > { %3791 = vst [vmem:[#allocation17_spill] sm:$0xff] %v3236_v11  ;;  %v3261_v8 = vand.u32 4294901760, %v3236_v11  ;;  %v3691_v0 = vand.u32 4294901760, %v3258_v31  ;;  %v3692_v59 = vand.u32 4294901760, %v3245_v29  ;;  %v3296_v42 = vand.u32 4294901760, %v3247_v45 }
 0x132   : > { %1174 = vmatpush.msra.mxu0 %v3250_v7  ;;  %1306 = vmatpush.msra.mxu3 %v3250_v7  ;;  %v3272_v40 = vsub.f32 %v3227_v37, %v3250_v7  ;;  %v3688_v39 = vand.u32 4294901760, %v3254_v27  ;;  %v1055_v60 = vadd.f32 %v2099_v41, %v1054_v48  ;;  %v3304_v19 = vand.u32 4294901760, %v3220_v34 }
 0x133   : > { %v3288_v4 = vsub.f32 %v3236_v11, %v3261_v8  ;;  %v3313_v41 = vsub.f32 %v3247_v45, %v3296_v42  ;;  %v1068_v26 = vadd.f32 %v1067_v47, %v3212_v13  ;;  %v1082_v61 = vadd.f32 %v1081_v56, %v3236_v11 }
 0x134   : > { %1176 = vmatpush.msra.mxu0 %v3231_v10  ;;  %1269 = vmatpush.msra.mxu2 %v3272_v40  ;;  %v3689_v63 = vand.u32 4294901760, %v3272_v40  ;;  %v1215_v33 = vsub.f32 %v3254_v27, %v3688_v39  ;;  %v1227_v48 = vsub.f32 %v3241_v22, %v3690_v18  ;;  %v3324_v23 = vand.u32 4294901760, %v3182_v25 }
 0x135   : > { %1308 = vmatpush.msra.mxu3 %v3231_v10  ;;  %v3694_v46 = vand.u32 4294901760, %v3288_v4  ;;  %v1221_v47 = vsub.f32 %v3258_v31, %v3691_v0  ;;  %v1233_v56 = vsub.f32 %v3245_v29, %v3692_v59  ;;  %v1056_v18 = vadd.f32 %v2103_v30, %v1055_v60 }
 0x136   : > { %1178 = vmatpush.msra.mxu0 %v3215_v57  ;;  %1272 = vmatpush.msra.mxu2 %v3254_v27  ;;  %v1209_v1 = vsub.f32 %v3272_v40, %v3689_v63  ;;  %v3336_v63 = vsub.f32 %v3220_v34, %v3304_v19  ;;  %v3340_v49 = vsub.f32 %v1163_v20, %v3263_v2  ;;  %v1216_v59 = vand.u32 4294901760, %v1215_v33 }
 0x137   : > { %1310 = vmatpush.msra.mxu3 %v3215_v57  ;;  %v3347_v0 = vsub.f32 %v3106_v52, %v3266_v54  ;;  %v3793_v30 = vand.u32 4294901760, %v3277_v3  ;;  %v3794_v20 = vand.u32 4294901760, %v3281_v6  ;;  %v1083_v28 = vrot.slane %v1082_v61, 4 }
 0x138   : > { %1180 = vmatpush.msra.mxu0 %v3200_v17  ;;  %1275 = vmatpush.msra.mxu2 %v3258_v31  ;;  %v1210_v39 = vand.u32 4294901760, %v1209_v1  ;;  %v1446_v1 = vsub.f32 %v3288_v4, %v3694_v46  ;;  %v1069_v46 = vadd.f32 %v1068_v26, %v3227_v37  ;;  %v3369_v33 = vand.u32 4294901760, %v3159_v38 }
 0x139   : > { %1312 = vmatpush.msra.mxu3 %v3200_v17  ;;  %v3354_v60 = vsub.f32 %v3277_v3, %v3793_v30  ;;  %v3359_v13 = vsub.f32 %v3281_v6, %v3794_v20  ;;  %v1222_v30 = vand.u32 4294901760, %v1221_v47  ;;  %v1228_v20 = vand.u32 4294901760, %v1227_v48 }
 0x13a   : > { %1182 = vmatpush.msra.mxu0 %v3203_v12  ;;  %1211 = vmatpush.msra.mxu1 %v1210_v39  ;;  %v3366_v39 = vsub.f32 %v3182_v25, %v3324_v23  ;;  %v1234_v14 = vand.u32 4294901760, %v1233_v56  ;;  %v1447_v37 = vand.u32 4294901760, %v1446_v1  ;;  %v3378_v9 = vsub.f32 %v3159_v38, %v3369_v33 }
 0x13b   : > { %1278 = vmatpush.msra.mxu2 %v3241_v22  ;;  %1314 = vmatpush.msra.mxu3 %v3203_v12  ;;  %v3381_v32 = vand.u32 4294901760, %v3138_v44  ;;  %v1240_v47 = vand.u32 4294901760, %v3354_v60  ;;  %v1246_v56 = vand.u32 4294901760, %v3359_v13  ;;  %v1037_v1 = vadd.f32 %v3108_v5, %v3092_v15 }
 0x13c   : > { %1184 = vmatpush.msra.mxu0 %v3234_v51  ;;  %1217 = vmatpush.msra.mxu1 %v1216_v59  ;;  %v3795_v59 = vand.u32 4294901760, %v3313_v41  ;;  %v3395_v26 = vand.u32 4294901760, %v3340_v49  ;;  %v3796_v13 = vand.u32 4294901760, %v3336_v63  ;;  %v1057_v60 = vrot.slane %v1056_v18, 4 }
 0x13d   : > { %1281 = vmatpush.msra.mxu2 %v3245_v29  ;;  %1316 = vmatpush.msra.mxu3 %v3234_v51  ;;  %v1038_v5 = vadd.f32 %v3127_v58, %v1037_v1  ;;  %v1084_v53 = vadd.f32 %v1083_v28, %v1082_v61  ;;  %v3797_v16 = vand.u32 4294901760, %v3347_v0  ;;  %v3798_v58 = vand.u32 4294901760, %v3272_v40 }
 0x13e   : > { %1186 = vmatpush.msra.mxu0 %v3223_v50  ;;  %1223 = vmatpush.msra.mxu1 %v1222_v30  ;;  %v1452_v48 = vsub.f32 %v3313_v41, %v3795_v59  ;;  %v3398_v30 = vand.u32 4294901760, %v3129_v35  ;;  %v1070_v59 = vrot.slane %v1069_v46, 4  ;;  %v1458_v15 = vsub.f32 %v3336_v63, %v3796_v13 }
 0x13f   : > { %1284 = vmatpush.msra.mxu2 %v3277_v3  ;;  %1318 = vmatpush.msra.mxu3 %v3223_v50  ;;  %v1251_v52 = vsub.f32 %v3347_v0, %v3797_v16  ;;  %v3416_v13 = vand.u32 4294901760, %v3116_v24  ;;  %v1039_v61 = vadd.f32 %v3136_v36, %v1038_v5  ;;  %v1058_v45 = vadd.f32 %v1057_v60, %v1056_v18 }
 0x140   : > { %1188 = vmatpush.msra.mxu0 %v3266_v54  ;;  %1229 = vmatpush.msra.mxu1 %v1228_v20  ;;  %v3413_v20 = vsub.f32 %v3138_v44, %v3381_v32  ;;  %v1453_v28 = vand.u32 4294901760, %v1452_v48  ;;  %v1071_v1 = vadd.f32 %v1070_v59, %v1069_v46  ;;  %v3799_v16 = vand.u32 4294901760, %v3366_v39 }
 0x141   : > { %1287 = vmatpush.msra.mxu2 %v3281_v6  ;;  %1320 = vmatpush.msra.mxu3 %v3266_v54  ;;  %v1192_v34 = vsub.f32 %v3340_v49, %v3395_v26  ;;  %v3429_v40 = vsub.f32 %v3129_v35, %v3398_v30  ;;  %v3800_v48 = vand.u32 4294901760, %v3254_v27  ;;  %v1459_v36 = vand.u32 4294901760, %v1458_v15 }
 0x142   : > { %1339 = vmatpush.msrb.mxu0 %v3798_v58  ;;  %1235 = vmatpush.msra.mxu1 %v1234_v14  ;;  %v1464_v11 = vsub.f32 %v3366_v39, %v3799_v16  ;;  %v1040_v18 = vadd.f32 %v3152_v55, %v1039_v61  ;;  %v1072_v46 = vrot.slane %v1071_v1, 2  ;;  %v1059_v14 = vrot.slane %v1058_v45, 2 }
 0x143   : > { %1448 = vmatpush.msrb.mxu3 %v1447_v37  ;;  %1290 = vmatpush.msra.mxu2 %v3347_v0  ;;  %v1085_v37 = vrot.slane %v1084_v53, 2  ;;  %v3801_v59 = vand.u32 4294901760, %v3378_v9  ;;  %v1475_v60 = vand.u32 4294901760, %v3413_v20  ;;  %v3441_v27 = vsub.f32 %v3116_v24, %v3416_v13 }
 0x144   : > { %1343 = vmatpush.msrb.mxu0 %v3800_v48  ;;  %1241 = vmatpush.msra.mxu1 %v1240_v47  ;;  %v3802_v15 = vand.u32 4294901760, %v3258_v31  ;;  %v1041_v55 = vadd.f32 %v3174_v43, %v1040_v18  ;;  %v1060_v47 = vadd.f32 %v1059_v14, %v1058_v45  ;;  %v1465_v61 = vand.u32 4294901760, %v1464_v11 }
 0x145   : > { %1411 = vmatpush.msrb.mxu2 %v3261_v8  ;;  %1454 = vmatpush.msrb.mxu3 %v1453_v28  ;;  %v1470_v5 = vsub.f32 %v3378_v9, %v3801_v59  ;;  %v1086_v58 = vadd.f32 %v1085_v37, %v1084_v53  ;;  %v1073_v28 = vadd.f32 %v1072_v46, %v1071_v1  ;;  %v1252_v16 = vand.u32 4294901760, %v1251_v52 }
 0x146   : > { %1347 = vmatpush.msrb.mxu0 %v3802_v15  ;;  %1247 = vmatpush.msra.mxu1 %v1246_v56  ;;  %v1481_v48 = vand.u32 4294901760, %v3429_v40  ;;  %v3803_v53 = vand.u32 4294901760, %v3241_v22  ;;  %v3454_v31 = vand.u32 4294901760, %v1192_v34  ;;  %v1042_v43 = vadd.f32 %v3193_v21, %v1041_v55 }
 0x147   : > { %1413 = vmatpush.msrb.mxu2 %v3296_v42  ;;  %1460 = vmatpush.msrb.mxu3 %v1459_v36  ;;  %v1087_v59 = vrot.slane %v1086_v58, 1  ;;  %v1074_v45 = vrot.slane %v1073_v28, 1  ;;  %v1061_v1 = vrot.slane %v1060_v47, 1  ;;  %v1476_v52 = vsub.f32 %v3413_v20, %v1475_v60 }
 0x148   : > { %1351 = vmatpush.msrb.mxu0 %v3803_v53  ;;  %1253 = vmatpush.msra.mxu1 %v1252_v16  ;;  %v1487_v11 = vand.u32 4294901760, %v3441_v27  ;;  %v1656_v22 = vlaneseq  ;;  %v1471_v34 = vand.u32 4294901760, %v1470_v5  ;;  %v1043_v37 = vadd.f32 %v3217_v62, %v1042_v43 }
 0x149   : > { %1415 = vmatpush.msrb.mxu2 %v3304_v19  ;;  %1466 = vmatpush.msrb.mxu3 %v1465_v61  ;;  %v1088_v56 = vadd.f32 %v1087_v59, %v1086_v58  ;;  %v3464_v21 = vadd.f32 %v1074_v45, %v1073_v28  ;;  %v1062_v36 = vadd.f32 %v1061_v1, %v1060_v47  ;;  %v3804_v18 = vand.u32 4294901760, %v3245_v29 }
 0x14a   : > { %1293 = vmatmul.f32.vlgmr.msra.gmra.mxu2 %v3340_v49  ;;  %1324 = vmatmul.f32.vlgmr.msra.gmra.mxu3 %v3395_v26  ;;  %v1482_v46 = vsub.f32 %v3429_v40, %v1481_v48  ;;  %v1044_v14 = vrot.slane %v1043_v37, 4  ;;  %v3805_v5 = vmov 0.0   ;;  %v1477_v29 = vand.u32 4294901760, %v1476_v52 }
 0x14b   : > { %1355 = vmatpush.msrb.mxu0 %v3804_v18  ;;  %1382 = vmatpush.msrb.mxu1 %v3250_v7  ;;  %vm1124_vm1 = vcmp.gt.f32.partialorder %v1088_v56, 0.0  ;;  %vm1123_vm3 = vcmp.gt.f32.partialorder %v3464_v21, 0.0  ;;  %v1090_v62 = vmul.f32 1e-08, %v1062_v36  ;;  %v1488_v7 = vsub.f32 %v3441_v27, %v1487_v11 }
 0x14c   : > { %1417 = vmatpush.msrb.mxu2 %v3324_v23  ;;  %1472 = vmatpush.msrb.mxu3 %v1471_v34  ;;  %v3476_v58 = vsel %vm1124_vm1, 1.0, %v3805_v5  ;;  %vm1658_vm4 = vcmp.lt.s32.totalorder %v1656_v22, 256  ;;  %v3806_v55 = vand.u32 4294901760, %v3277_v3  ;;  %v1045_v28 = vadd.f32 %v1044_v14, %v1043_v37 }
 0x14d   : > { %1194 = vmatmul.f32.vlgmr.msra.gmra.mxu0 %v3454_v31  ;;  %1384 = vmatpush.msrb.mxu1 %v3231_v10  ;;  %v1652_v15 = vrot.slane %v3476_v58, 7  ;;  %v3488_v47 = vsel %vm1123_vm3, 1.0, %v3805_v5  ;;  %v1092_v61 = vadd.f32 %v1090_v62, %v1088_v56  ;;  %v1483_v10 = vand.u32 4294901760, %v1482_v46  ;;  %v3818_v62 = vld [vmem:[#allocation9_spill] sm:$0xff] }
 0x14e   : > { %1359 = vmatpush.msrb.mxu0 %v3806_v55  ;;  %1419 = vmatpush.msrb.mxu2 %v3369_v33  ;;  %v3807_v59 = vand.u32 4294901760, %v3281_v6  ;;  %v1046_v3 = vrot.slane %v1045_v28, 2  ;;  %v1489_v53 = vand.u32 4294901760, %v1488_v7  ;;  %v3808_v43 = vand.u32 4294901760, %v3347_v0  ;;  %v3822_v55 = vld [vmem:[#allocation13_spill] sm:$0xff] }
 0x14f   : > { %1478 = vmatpush.msrb.mxu3 %v1477_v29  ;;  %1255 = vmatmul.f32.vlgmr.msra.gmra.mxu1 %v3263_v2  ;;  %v1654_v16 = vsel %vm1653_vm2, %v3488_v47, %v1652_v15  ;;  %2104 = vrcp.f32 %v1092_v61  ;;  %v3809_v1 = vand.u32 4294901760, %v3288_v4  ;;  %v3810_v56 = vand.u32 4294901760, %v3313_v41  ;;  %v3820_v29 = vld [vmem:[#allocation11_spill] sm:$0xff]  ;;  %v3821_v15 = vld [vmem:[#allocation12_spill] sm:$0xff] }
 0x150   : > { %1363 = vmatpush.msrb.mxu0 %v3807_v59  ;;  %1386 = vmatpush.msrb.mxu1 %v3215_v57  ;;  %1660 = vst.msk [vmem:[%s3498_s25] sm:$0x3] %vm1658_vm4, %v1654_v16  ;;  %v1047_v6 = vadd.f32 %v1046_v3, %v1045_v28  ;;  %v1119_v22 = vand.u32 2147483648, %v1092_v61  ;;  %v3811_v34 = vand.u32 4294901760, %v3336_v63  ;;  %vm1113_vm7 = vweird.f32 %v1092_v61 }
 0x151   : > { %1421 = vmatpush.msrb.mxu2 %v3381_v32  ;;  %1484 = vmatpush.msrb.mxu3 %v1483_v10  ;;  %v3824_v10 = vld [vmem:[#allocation16_spill] sm:$0xff] }
 0x152   : > { %1367 = vmatpush.msrb.mxu0 %v3808_v43  ;;  %1388 = vmatpush.msrb.mxu1 %v3200_v17  ;;  %v1048_v57 = vrot.slane %v1047_v6, 1  ;;  %v1120_v37 = vor.u32 1.1754944e-38, %v1119_v22 }
 0x153   : > { %1423 = vmatpush.msrb.mxu2 %v3398_v30  ;;  %1490 = vmatpush.msrb.mxu3 %v1489_v53 }
 0x154   : > { %1492 = vmatmul.f32.vlgmr.msrb.gmra.mxu3 %v3263_v2  ;;  %1506 = vmatpush.msra.mxu0 %v3288_v4  ;;  %v1049_v0 = vadd.f32 %v1048_v57, %v1047_v6 }
 0x155   : > { %1619 = vmatpush.msra.mxu3 %v3261_v8  ;;  %1390 = vmatpush.msrb.mxu1 %v3203_v12  ;;  %v2105_v45 = vpop.eup %2104 }
 0x156   : > { %1425 = vmatpush.msrb.mxu2 %v3416_v13  ;;  %1369 = vmatmul.f32.vlgmr.msrb.gmra.mxu0 %v3263_v2  ;;  %v1109_v17 = vmul.f32 %v2105_v45, %v1092_v61  ;;  %v1089_v52 = vmul.f32 1e-08, %v1049_v0  ;;  %vm1114_vm5 = vweird.f32 %v2105_v45 }
 0x157   : > { %1431 = vmatmul.f32.vlgmr.msrb.gmra.mxu2 %v3454_v31  ;;  %1509 = vmatpush.msra.mxu0 %v3313_v41  ;;  %vm1115_vm8 = vmor %vm1113_vm7, %vm1114_vm5 }
 0x158   : > { %1576 = vmatpush.msra.mxu2 %v3809_v1  ;;  %1621 = vmatpush.msra.mxu3 %v3296_v42  ;;  %v1110_v12 = vsub.f32 1.0, %v1109_v17  ;;  %v3523_v31 = vadd.f32 %v1089_v52, %v3464_v21 }
 0x159   : > { %1392 = vmatpush.msrb.mxu1 %v3234_v51  ;;  %1512 = vmatpush.msra.mxu0 %v3336_v63  ;;  %v1117_v51 = vand.u32 2147483647, %v1092_v61 }
 0x15a   : > { %1580 = vmatpush.msra.mxu2 %v3810_v56  ;;  %1623 = vmatpush.msra.mxu3 %v3304_v19  ;;  %v1111_v4 = vmul.f32 %v2105_v45, %v1110_v12  ;;  %2106 = vrcp.f32 %v3523_v31  ;;  %vm1098_vm10 = vweird.f32 %v3523_v31 }
 0x15b   : > { %1394 = vmatpush.msrb.mxu1 %v3223_v50  ;;  %1515 = vmatpush.msra.mxu0 %v3366_v39  ;;  %v3812_v50 = vand.u32 4294901760, %v3366_v39  ;;  %vm1118_vm6 = vcmp.eq.f32.partialorder %v1117_v51, 8.507059e+37 }
 0x15c   : > { %1584 = vmatpush.msra.mxu2 %v3811_v34  ;;  %1625 = vmatpush.msra.mxu3 %v3324_v23  ;;  %v1112_v41 = vadd.f32 %v2105_v45, %v1111_v4 }
 0x15d   : > { %1396 = vmatpush.msrb.mxu1 %v3266_v54  ;;  %1518 = vmatpush.msra.mxu0 %v3378_v9  ;;  %v3813_v54 = vand.u32 4294901760, %v3378_v9 }
 0x15e   : > { %1398 = vmatmul.f32.vlgmr.msrb.gmra.mxu1 %v3263_v2  ;;  %1588 = vmatpush.msra.mxu2 %v3812_v50  ;;  %v1116_v63 = vsel %vm1115_vm8, %v2105_v45, %v1112_v41 }
 0x15f   : > { %1543 = vmatpush.msra.mxu1 %v3261_v8  ;;  %1627 = vmatpush.msra.mxu3 %v3369_v33  ;;  %v1121_v21 = vsel %vm1118_vm6, %v1120_v37, %v1116_v63 }
 0x160   : > { %1521 = vmatpush.msra.mxu0 %v3413_v20  ;;  %1592 = vmatpush.msra.mxu2 %v3813_v54  ;;  %v3545_v39 = vmul.f32 %v3476_v58, %v1121_v21  ;;  %v1662_v36 = vmul.f32 %v1121_v21, %v3116_v24  ;;  %v1664_v8 = vmul.f32 %v1121_v21, %v3129_v35  ;;  %v2107_v18 = vpop.eup %2106 }
 0x161   : > { %1545 = vmatpush.msra.mxu1 %v3296_v42  ;;  %1629 = vmatpush.msra.mxu3 %v3381_v32  ;;  %v1666_v9 = vmul.f32 %v1121_v21, %v3138_v44  ;;  %v1094_v42 = vmul.f32 %v2107_v18, %v3523_v31  ;;  %v1668_v46 = vmul.f32 %v1121_v21, %v3159_v38  ;;  %v3814_v44 = vld [vmem:[#allocation15_spill] sm:$0xff]  ;;  %vm1099_vm9 = vweird.f32 %v2107_v18 }
 0x162   : > { %1524 = vmatpush.msra.mxu0 %v3429_v40  ;;  %1596 = vmatpush.msra.mxu2 %v1475_v60  ;;  %v1670_v24 = vmul.f32 %v1121_v21, %v3182_v25  ;;  %1678 = vst [vmem:[%s3561_s29 + $0x8] sm:$0xff] %v1662_v36  ;;  %v1672_v38 = vmul.f32 %v1121_v21, %v3814_v44  ;;  %v1104_v25 = vand.u32 2147483648, %v3523_v31  ;;  %v1102_v40 = vand.u32 2147483647, %v3523_v31  ;;  %vm1100_vm11 = vmor %vm1098_vm10, %vm1099_vm9 }
 0x163   : > { %1547 = vmatpush.msra.mxu1 %v3304_v19  ;;  %1631 = vmatpush.msra.mxu3 %v3398_v30  ;;  %v1095_v35 = vsub.f32 1.0, %v1094_v42  ;;  %1680 = vst [vmem:[%s3561_s29 + $0x18] sm:$0xff] %v1664_v8  ;;  %v3815_v19 = vld [vmem:[#allocation18_spill] sm:$0xff] }
 0x164   : > { %1527 = vmatpush.msra.mxu0 %v3441_v27  ;;  %1600 = vmatpush.msra.mxu2 %v1481_v48  ;;  %v1674_v20 = vmul.f32 %v1121_v21, %v3815_v19  ;;  %1682 = vst [vmem:[%s3561_s29 + $0x28] sm:$0xff] %v1666_v9  ;;  %vm1103_vm12 = vcmp.eq.f32.partialorder %v1102_v40, 8.507059e+37 }
 0x165   : > { %1549 = vmatpush.msra.mxu1 %v3324_v23  ;;  %1633 = vmatpush.msra.mxu3 %v3416_v13  ;;  %v1096_v23 = vmul.f32 %v2107_v18, %v1095_v35  ;;  %1684 = vst [vmem:[%s3561_s29 + $0x38] sm:$0xff] %v1668_v46 }
 0x166   : > { %1530 = vmatmul.f32.vlgmr.msra.gmra.mxu0 %v3340_v49  ;;  %1635 = vmatmul.f32.vlgmr.msra.gmra.mxu3 %v3263_v2  ;;  %v3816_v49 = vld [vmem:[#allocation17_spill] sm:$0xff]  ;;  %1686 = vst [vmem:[%s3561_s29 + $0x48] sm:$0xff] %v1670_v24 }
 0x167   : > { %1551 = vmatpush.msra.mxu1 %v3369_v33  ;;  %1604 = vmatpush.msra.mxu2 %v1487_v11  ;;  %v1676_v60 = vmul.f32 %v1121_v21, %v3816_v49  ;;  %v1097_v48 = vadd.f32 %v2107_v18, %v1096_v23  ;;  %1688 = vst [vmem:[%s3561_s29 + $0x58] sm:$0xff] %v1672_v38  ;;  %v1105_v33 = vor.u32 1.1754944e-38, %v1104_v25  ;;  %v3817_v11 = vld [vmem:[#allocation8_spill] sm:$0xff] }
 0x168   : > { %1606 = vmatmul.f32.vlgmr.msra.gmra.mxu2 %v3263_v2  ;;  %1690 = vst [vmem:[%s3561_s29 + $0x68] sm:$0xff] %v1674_v20 }
 0x169   : > { %1553 = vmatpush.msra.mxu1 %v3381_v32  ;;  %v1101_v27 = vsel %vm1100_vm11, %v2107_v18, %v1097_v48  ;;  %1692 = vst [vmem:[%s3561_s29 + $0x78] sm:$0xff] %v1676_v60 }
 0x16a   : > { %v1106_v2 = vsel %vm1103_vm12, %v1105_v33, %v1101_v27 }
 0x16b   : > { %1555 = vmatpush.msra.mxu1 %v3398_v30  ;;  %v3589_v32 = vmul.f32 %v3488_v47, %v1106_v2  ;;  %v1661_v14 = vmul.f32 %v1106_v2, %v3817_v11  ;;  %v1663_v5 = vmul.f32 %v1106_v2, %v3818_v62  ;;  %v3819_v30 = vld [vmem:[#allocation10_spill] sm:$0xff]  ;;  %v1667_v7 = vmul.f32 %v1106_v2, %v3820_v29 }
 0x16c   : > { %v1665_v58 = vmul.f32 %v1106_v2, %v3819_v30  ;;  %v1671_v28 = vmul.f32 %v1106_v2, %v3822_v55  ;;  %v3823_v47 = vld [vmem:[#allocation14_spill] sm:$0xff]  ;;  %v1675_v16 = vmul.f32 %v1106_v2, %v3824_v10 }
 0x16d   : > { %1557 = vmatpush.msra.mxu1 %v3416_v13  ;;  %v1669_v13 = vmul.f32 %v1106_v2, %v3821_v15  ;;  %1677 = vst [vmem:[%s3561_s29] sm:$0xff] %v1661_v14  ;;  %v1673_v61 = vmul.f32 %v1106_v2, %v3823_v47 }
 0x16e   : > { %1561 = vmatmul.f32.vlgmr.msra.gmra.mxu1 %v3395_v26  ;;  %1679 = vst [vmem:[%s3561_s29 + $0x10] sm:$0xff] %v1663_v5 }
 0x16f   : > { %1681 = vst [vmem:[%s3561_s29 + $0x20] sm:$0xff] %v1665_v58 }
 0x170   : > { %1683 = vst [vmem:[%s3561_s29 + $0x30] sm:$0xff] %v1667_v7 }
 0x171   : > { %1685 = vst [vmem:[%s3561_s29 + $0x40] sm:$0xff] %v1669_v13 }
 0x172   : > { %1687 = vst [vmem:[%s3561_s29 + $0x50] sm:$0xff] %v1671_v28 }
 0x173   : > { %1689 = vst [vmem:[%s3561_s29 + $0x60] sm:$0xff] %v1673_v61 }
 0x174   : > { %1691 = vst [vmem:[%s3561_s29 + $0x70] sm:$0xff] %v1675_v16 }
 0x175   : > { %2135 = shalt.err (!%p2132_p5)
}
 0x176   : > { %s2225_s29 = smov 256   ;;  %s2226_s8 = smov 16  }
 0x177   : > { %1960 = dma.vmem_to_hbm [thread:$0]  (%p2297_p4), %s1723_s12, 2048, %s1725_s13, %s1694_s14, %s2225_s29, %s2225_s29, %s2226_s8  }
 0x178   : > { %s1953_s9 = sshll.u32 %s2210_s21, 1  ;;  %s1745_s10 = sshll.u32 %s3498_s25, 4  ;;  %s1746_s10 = int_to_ptr.vmem [resolvable:$true] %s1745_s10 }
 0x179   : > { %s1743_s1 = scalar_lea.hbm %s3673_s5, %s1953_s9  ;;  %s1708_s2 = scalar_lea.sflag [#allocation5], %s3449_s17 }
 0x17a   : > { %s1747_s0 = sshll.u32 %s1743_s1, 4  ;;  %s2156_s21 = scalar_lea.hbm %s3673_s5, 4  ;;  %s1748_s0 = int_to_ptr.hbm [resolvable:$true] %s1747_s0 }
 0x17b   : > { %s2150_s15 = sshra.s32 %s1748_s0, 4  ;;  %s2151_s15 = int_to_ptr.hbm [resolvable:$true] %s2150_s15 }
 0x17c   : > { %s2152_s16 = scalar_lea.hbm %s2151_s15, 2  ;;  %p2157_p10 = scmp.lt.s32.totalorder %s2151_s15, %s3673_s5 }
 0x17d   : > { %p2153_p6 = scmp.ne.s32.totalorder %s2151_s15, %s2152_s16  ;;  %p2158_p11 = scmp.lt.s32.totalorder %s2156_s21, %s2152_s16 }
 0x17f   : > { %p2154_p7 = pnand %p2153_p6, %p2297_p4  ;;  %p2159_p12 = por %p2158_p11, %p2157_p10 }
 0x181   : > { %p2155_p9 = pneg %p2154_p7 }
 0x183   : > { %p2160_p13 = pnand %p2159_p12, %p2155_p9 }
 0x185   : > { %2163 = shalt.err (!%p2160_p13)
}
 0x186   : > { %1961 = dma.vmem_to_hbm [thread:$0]  (%p2297_p4), %s1746_s10, 32, %s1748_s0, %s1708_s2   ;;  %vm1646_vm13 = vcmask 1043456  }
 0x187   : > { %s1958_s3 = sshll.u32 %s2314_s7, 3 }
 0x188   : > { %s314_s13 = scalar_lea.vmem %s3672_s4, %s1958_s3 }
 0x1ca   : > { %v1195_v26 = vpop.f32.mrf.mxu0 }
 0x1cc   : > { %v1256_v59 = vpop.f32.mrf.mxu1 }
 0x1cd   : > { %v1294_v3 = vpop.f32.mrf.mxu2  ;;  %v1325_v53 = vpop.f32.mrf.mxu3  ;;  %v1257_v6 = vadd.f32 %v1256_v59, %v1195_v26 }
 0x1cf   : > { %v1295_v0 = vadd.f32 %v1294_v3, %v1257_v6 }
 0x1d1   : > { %v1326_v12 = vadd.f32 %v1325_v53, %v1295_v0 }
 0x1d3   : > { %v1370_v43 = vpop.f32.mrf.mxu0 }
 0x1d4   : > { %v1371_v51 = vadd.f32 %v1370_v43, %v1326_v12 }
 0x1d7   : > { %v1493_v17 = vpop.f32.mrf.mxu3 }
 0x1da   : > { %v1432_v45 = vpop.f32.mrf.mxu2 }
 0x1db   : > { %v1399_v57 = vpop.f32.mrf.mxu1  ;;  %v1494_v52 = vadd.f32 %v1493_v17, %v1432_v45 }
 0x1dc   : > { %v1400_v50 = vadd.f32 %v1399_v57, %v1371_v51 }
 0x1de   : > { %v1641_v54 = vmul.f32 %v3589_v32, %v1400_v50 }
 0x1e3   : > { %v1531_v1 = vpop.f32.mrf.mxu0 }
 0x1e4   : > { %v1532_v56 = vadd.f32 %v1531_v1, %v1494_v52 }
 0x1e9   : > { %v1636_v41 = vpop.f32.mrf.mxu3 }
 0x1eb   : > { %v1562_v31 = vpop.f32.mrf.mxu1  ;;  %v1607_v4 = vpop.f32.mrf.mxu2 }
 0x1ec   : > { %v1563_v22 = vadd.f32 %v1562_v31, %v1532_v56 }
 0x1ee   : > { %v1608_v34 = vadd.f32 %v1607_v4, %v1563_v22 }
 0x1f0   : > { %v1637_v37 = vadd.f32 %v1636_v41, %v1608_v34 }
 0x1f2   : > { %v1642_v63 = vmul.f32 %v3545_v39, %v1637_v37 }
 0x1f4   : > { %v1645_v21 = vrot.slane %v1642_v63, 4 }
 0x1f6   : > { %v1647_v36 = vsel %vm1646_vm13, %v1641_v54, %v1645_v21 }
 0x1f7   : > { %1649 = vst [vmem:[%s314_s13] sm:$0x77] %v1647_v36 }
 0x1f8 PF: > { %p1971_p4 = scmp.ge.s32.totalorder %s2218_s23, 2  ;;  %s1759_s14 = sand.u32 1, %s2198_s18  }
 0x1f9   : > { %s1760_s7 = scalar_lea.sflag [#allocation3], %s1759_s14 }
 0x1fa   : > { %p1965_p0 = pnand %p1971_p4, %p2304_p8 }
 0x1fc   : > { %p1966_p1 = pneg %p1965_p0 }
 0x1fe   : > { %2189 = dma.done.wait (%p1966_p1), %s1760_s7, 2048  }
 0x1ff   : > { %2191 = vsyncadd (%p1966_p1), %s1760_s7, 4294965248  ;;  %s1782_s29 = scalar_lea.sflag [#allocation5], %s1759_s14 }
 0x200   : > { %2193 = dma.done.wait (%p1966_p1), %s1782_s29, 32  }
 0x201   : > { %2195 = vsyncadd (%p1966_p1), %s1782_s29, 4294967264  ;;  %s22_s23 = sadd.s32 1, %s2218_s23   ;;  %s3826_s18 = smov %s2202_s19 }
 0x202   : > { %p19_p2 = scmp.ge.s32.totalorder %s22_s23, 4   ;;  %s3827_s19 = smov %s2206_s20 }
 0x203   : > { %s3828_s20 = smov %s2310_s6  ;;  %s3829_s21 = smov %s2214_s22 }
 0x204   : > { %s3830_s22 = smov %s3832_s26  ;;  %21 = sbr.rel (!%p19_p2) target bundleno = 11 (0xb), region = 102 }
 0x209   :  { %1788 = vsyncpa [#allocation3], 1 }
 0x20a   :  { %1790 = vsyncpa [#allocation3 + $0x1], 1 }
 0x20b   :  { %1791 = vsyncpa [#allocation5], 1 }
 0x20c   :  { %1793 = vsyncpa [#allocation5 + $0x1], 1 }

</bundles_post_ra>
